<compile_context>
chip_gen: v7x
topology: tpu7x:2x2x1
jax: 0.10.0
libtpu: 0.0.40
codegen_flags: <defaults>
</compile_context>

<pallas_src>
import functools

import jax
import jax.numpy as jnp
from jax import lax
from jax.experimental import pallas as pl
from jax.experimental.pallas import tpu as pltpu

# ---------------- synthetic "args" configuration ----------------
NUM_LABELS     = 8        # number_of_labels (input node-feature dim)
HIDDEN_DIM     = 32       # args.hidden_dim
K              = 3        # args.k (number of GNN layers)
TENSOR_NEURONS = 16       # args.tensor_neurons
REDUCTION      = 4        # args.reduction
USE_PE         = False    # args.use_pe
POOL           = "multi"  # args.pool in {'multi','att','sum'}
SIM_DIST       = "sim"    # args.sim_dist
GNN_OPERATOR   = "gcn"    # args.gnn_operator
DCAT   = HIDDEN_DIM * (K + 1)   # concatenated feature dim = 128
N_PAD  = 16                     # each graph padded to this node count
N_TOT  = 2 * N_PAD              # both graphs stacked: 32 rows


# ---------------- the single fused kernel ----------------
def grasp_kernel(scal_ref,                                   # SMEM f32[2]: delta, alpha
                 x_ref, a_ref, rowscale_ref, selg_ref, invn_ref,
                 prew_ref, preb_ref, convw_ref, convb_ref,
                 attw_ref, mu_ref,
                 p1w_ref, p1b_ref, p2w_ref, p2b_ref,
                 ntn_vh_ref, ntn_sel_ref, ntn_blk_ref, ntn_b_ref,
                 s1w_ref, s1b_ref, s2w_ref, s2b_ref,
                 o_ref):
    delta = scal_ref[0]
    alpha = scal_ref[1]

    x = x_ref[...]                    # (32, 8)  bf16, zero in padded rows
    a = a_ref[...]                    # (32, 32) bf16 block-diag normalized A_hat
    rowscale = rowscale_ref[...]      # (32, 1)  f32  GraphSizeNorm 1/sqrt(n_g) per row

    # ---- pre Linear + GraphSizeNorm (padded rows carry scaled bias; they are
    #      excluded from every pooling reduction by the selector matrix) ----
    f = (jnp.dot(x, prew_ref[...], preferred_element_type=jnp.float32)
         + preb_ref[...]) * rowscale                               # (32, H) f32

    parts = [f * (1.0 + delta)]
    feats = f
    # first K-1 GCN layers: relu + residual (dropout = identity in eval mode)
    for i in range(K - 1):
        prev = feats
        xw = jnp.dot(feats.astype(jnp.bfloat16), convw_ref[i],
                     preferred_element_type=jnp.float32)           # (32, H)
        y = jnp.dot(a, xw.astype(jnp.bfloat16),
                    preferred_element_type=jnp.float32) + convb_ref[i]
        feats = jnp.maximum(y, 0.0) + prev
        parts.append(feats)
    # last GCN layer: no relu, no residual
    xw = jnp.dot(feats.astype(jnp.bfloat16), convw_ref[K - 1],
                 preferred_element_type=jnp.float32)
    y = jnp.dot(a, xw.astype(jnp.bfloat16),
                preferred_element_type=jnp.float32) + convb_ref[K - 1]
    parts.append(y)

    slab = jnp.concatenate(parts, axis=-1)                          # (32, DCAT) f32
    slab_bf = slab.astype(jnp.bfloat16)

    # ---- batched pooling for both graphs (selector encodes graph + validity) --
    selg = selg_ref[...]                                            # (2, 32) bf16
    invn = invn_ref[...]                                            # (2, 1)  f32
    mu = mu_ref[...]                                                # (1, DCAT) f32

    ssum = jnp.dot(selg, slab_bf, preferred_element_type=jnp.float32)   # (2, DCAT)
    mean = ssum * invn
    tg = jnp.tanh(jnp.dot(mean.astype(jnp.bfloat16), attw_ref[...],
                          preferred_element_type=jnp.float32))          # (2, DCAT)

    row = lax.broadcasted_iota(jnp.int32, (N_TOT, 1), 0)
    gmask = (row < N_PAD).astype(jnp.float32)                           # (32, 1)
    tg_rows = gmask * tg[0:1, :] + (1.0 - gmask) * tg[1:2, :]           # (32, DCAT)
    coefs = jax.nn.sigmoid(jnp.sum(slab * tg_rows, axis=1, keepdims=True))  # (32, 1)
    att = jnp.dot(selg, (coefs * slab).astype(jnp.bfloat16),
                  preferred_element_type=jnp.float32)                   # (2, DCAT)

    if POOL == "multi":
        pooled = mu * att + (1.0 - mu) * ssum
    elif POOL == "att":
        pooled = att
    else:
        pooled = ssum                                                   # (2, DCAT)

    # ---- post MLP, batched over both graphs ----
    h = jnp.maximum(jnp.dot(pooled.astype(jnp.bfloat16), p1w_ref[...],
                            preferred_element_type=jnp.float32) + p1b_ref[...], 0.0)
    gh = jnp.dot(h.astype(jnp.bfloat16), p2w_ref[...],
                 preferred_element_type=jnp.float32) + p2b_ref[...]     # (2, H)
    gx = gh[0:1, :]
    hx = gh[1:2, :]

    # ---- TensorNetworkModule ----
    # block-diag input  bd = [[gx, 0], [0, hx]]  (2, 2H)
    r2 = lax.broadcasted_iota(jnp.int32, (2, 1), 0)
    m0 = (r2 == 0).astype(jnp.float32)                                  # (2, 1)
    bd = jnp.concatenate([gh * m0, gh * (1.0 - m0)], axis=1)            # (2, 2H)
    bd_bf = bd.astype(jnp.bfloat16)

    # one matmul gives v = gx @ W_flat (row 0) and hrep = hx @ Repeat (row 1)
    vh = jnp.dot(bd_bf, ntn_vh_ref[...], preferred_element_type=jnp.float32)  # (2, T*H)
    prod = vh[0:1, :] * vh[1:2, :]                                            # (1, T*H)
    s_bil = jnp.dot(prod.astype(jnp.bfloat16), ntn_sel_ref[...],
                    preferred_element_type=jnp.float32)                       # (1, T)
    # one matmul gives both block terms; row-sum combines them
    blk2 = jnp.dot(bd_bf, ntn_blk_ref[...], preferred_element_type=jnp.float32)  # (2, T)
    blk = blk2[0:1, :] + blk2[1:2, :]
    scores = jnp.maximum(s_bil + blk + ntn_b_ref[...], 0.0)                   # (1, T)

    # ---- scoring MLP ----
    sc = jnp.maximum(jnp.dot(scores.astype(jnp.bfloat16), s1w_ref[...],
                             preferred_element_type=jnp.float32) + s1b_ref[...], 0.0)
    sc = jnp.dot(sc.astype(jnp.bfloat16), s2w_ref[...],
                 preferred_element_type=jnp.float32) + s2b_ref[...]           # (1, 1)

    diff = gx - hx
    l2 = jnp.sqrt(jnp.sum(diff * diff, axis=1, keepdims=True))                # (1, 1)

    if SIM_DIST == "sim":
        out = alpha * jax.nn.sigmoid(sc) + (1.0 - alpha) * jax.nn.sigmoid(-l2)
    else:
        # metric == 'ged' branch would be: -alpha*score + (1-alpha)*l2
        out = alpha * sc - (1.0 - alpha) * l2
    o_ref[...] = out


def fused_grasp(p, scal, x_st, a_bd, rowscale, selg, invn):
    smem = pl.BlockSpec(memory_space=pltpu.MemorySpace.SMEM)
    vmem = pl.BlockSpec(memory_space=pltpu.MemorySpace.VMEM)
    args = (scal, x_st, a_bd, rowscale, selg, invn,
            p["prew"], p["preb"], p["convw"], p["convb"],
            p["attw"], p["mu"],
            p["p1w"], p["p1b"], p["p2w"], p["p2b"],
            p["ntn_vh"], p["ntn_sel"], p["ntn_blk"], p["ntn_b"],
            p["s1w"], p["s1b"], p["s2w"], p["s2b"])
    return pl.pallas_call(
        grasp_kernel,
        out_shape=jax.ShapeDtypeStruct((1, 1), jnp.float32),
        in_specs=[smem] + [vmem] * (len(args) - 1),
        out_specs=vmem,
        cost_estimate=pl.CostEstimate(flops=700_000, transcendentals=1_000,
                                      bytes_accessed=300_000),
    )(*args)


# ---------------- model glue (plain JAX) ----------------
def grasp_forward(p, x1, a1, x2, a2, n1, n2):
    # Stack both graphs block-diagonally: rows [0:N_PAD) = graph 1 (n1 valid),
    # rows [N_PAD:2*N_PAD) = graph 2 (n2 valid).  Padded rows/cols of A are zero
    # so they never contaminate valid rows; the selector matrix excludes them
    # from every pooling reduction (padded slab rows carry biases, NOT zeros).
    x_st = jnp.zeros((N_TOT, NUM_LABELS), jnp.float32)
    x_st = x_st.at[:n1].set(x1).at[N_PAD:N_PAD + n2].set(x2)
    a_bd = jnp.zeros((N_TOT, N_TOT), jnp.float32)
    a_bd = a_bd.at[:n1, :n1].set(a1).at[N_PAD:N_PAD + n2, N_PAD:N_PAD + n2].set(a2)

    # per-row GraphSizeNorm scale 1/sqrt(n_g)
    rowscale = jnp.concatenate(
        [jnp.full((N_PAD, 1), 1.0 / float(n1) ** 0.5, jnp.float32),
         jnp.full((N_PAD, 1), 1.0 / float(n2) ** 0.5, jnp.float32)], axis=0)
    # graph-membership-AND-validity selector (used for both sum and att pooling)
    selg = jnp.zeros((2, N_TOT), jnp.float32)
    selg = selg.at[0, :n1].set(1.0).at[1, N_PAD:N_PAD + n2].set(1.0)
    invn = jnp.array([[1.0 / n1], [1.0 / n2]], jnp.float32)
    scal = jnp.concatenate([p["delta"], p["alpha"]])          # (2,) = [delta, alpha]

    score = fused_grasp(p, scal,
                        x_st.astype(jnp.bfloat16), a_bd.astype(jnp.bfloat16),
                        rowscale, selg.astype(jnp.bfloat16), invn)   # (1, 1)
    return score.reshape(-1)                                          # (1,)


# ---------------- deterministic parameters (kernel-ready layout) ----------------
def init_params(key):
    ks = iter(jax.random.split(key, 64))

    def lin(in_dim, out_dim):
        s = 1.0 / jnp.sqrt(jnp.float32(in_dim))
        wT = jax.random.uniform(next(ks), (in_dim, out_dim), jnp.float32, -s, s)
        b = jax.random.uniform(next(ks), (1, out_dim), jnp.float32, -s, s)
        return wT, b

    p = {}
    prew, preb = lin(NUM_LABELS, HIDDEN_DIM)
    p["prew"], p["preb"] = prew.astype(jnp.bfloat16), preb

    convs = [lin(HIDDEN_DIM, HIDDEN_DIM) for _ in range(K)]
    p["convw"] = jnp.stack([w for w, _ in convs]).astype(jnp.bfloat16)   # (K, H, H)
    p["convb"] = jnp.stack([b for _, b in convs])                        # (K, 1, H)

    p["attw"] = jax.random.uniform(next(ks), (DCAT, DCAT), jnp.float32,
                                   -0.1, 0.1).astype(jnp.bfloat16)

    # NTN bilinear weight W (D, D, T), rearranged so ntn_wb[i, t*D + j] = W[i, j, t]
    w3 = jax.random.uniform(next(ks), (HIDDEN_DIM, HIDDEN_DIM, TENSOR_NEURONS),
                            jnp.float32, -0.1, 0.1)
    ntn_wb = jnp.transpose(w3, (0, 2, 1)).reshape(
        HIDDEN_DIM, TENSOR_NEURONS * HIDDEN_DIM)                         # (D, T*D)
    ntn_rep = jnp.tile(jnp.eye(HIDDEN_DIM, dtype=jnp.float32),
                       (1, TENSOR_NEURONS))                              # (D, T*D)
    # stacked so ONE matmul of [[gx,0],[0,hx]] yields v (row 0) and hrep (row 1)
    p["ntn_vh"] = jnp.concatenate([ntn_wb, ntn_rep], axis=0).astype(jnp.bfloat16)
    p["ntn_sel"] = jnp.repeat(jnp.eye(TENSOR_NEURONS, dtype=jnp.float32),
                              HIDDEN_DIM, axis=0).astype(jnp.bfloat16)   # (T*D, T)

    wblk = jax.random.uniform(next(ks), (TENSOR_NEURONS, 2 * HIDDEN_DIM),
                              jnp.float32, -0.1, 0.1)
    p["ntn_blk"] = jnp.concatenate([wblk[:, :HIDDEN_DIM].T,
                                    wblk[:, HIDDEN_DIM:].T],
                                   axis=0).astype(jnp.bfloat16)          # (2D, T)
    p["ntn_b"] = jax.random.uniform(next(ks), (1, TENSOR_NEURONS),
                                    jnp.float32, -0.1, 0.1)

    p1w, p1b = lin(DCAT, DCAT // REDUCTION)
    p["p1w"], p["p1b"] = p1w.astype(jnp.bfloat16), p1b
    p2w, p2b = lin(DCAT // REDUCTION, HIDDEN_DIM)
    p["p2w"], p["p2b"] = p2w.astype(jnp.bfloat16), p2b
    s1w, s1b = lin(TENSOR_NEURONS, TENSOR_NEURONS)
    p["s1w"], p["s1b"] = s1w.astype(jnp.bfloat16), s1b
    s2w, s2b = lin(TENSOR_NEURONS, 1)
    p["s2w"], p["s2b"] = s2w.astype(jnp.bfloat16), s2b

    # scale_init(): alpha = 0, delta = 1, mu = 0.5 (pool == 'multi')
    p["alpha"] = jnp.zeros((1,), jnp.float32)
    p["delta"] = jnp.ones((1,), jnp.float32)
    p["mu"] = jnp.full((1, DCAT), 0.5, jnp.float32)
    return p


def dense_gcn_adj(edge_list, n):
    ei = jnp.array(edge_list, dtype=jnp.int32)                       # (E, 2)
    a = jnp.zeros((n, n), jnp.float32).at[ei[:, 0], ei[:, 1]].set(1.0)
    a = a + jnp.eye(n, dtype=jnp.float32)                            # self loops
    deg = jnp.sum(a, axis=1)
    dinv = 1.0 / jnp.sqrt(deg)
    return a * dinv[:, None] * dinv[None, :]


def undirected(pairs):
    out = []
    for u, v in pairs:
        out.append((u, v))
        out.append((v, u))
    return out


if __name__ == "__main__":
    key = jax.random.PRNGKey(0)
    k_par, k_x1, k_x2 = jax.random.split(key, 3)

    params = init_params(k_par)

    n1, n2 = 10, 12
    edges1 = undirected([(i, i + 1) for i in range(n1 - 1)]
                        + [(0, 5), (2, 7), (3, 9)])
    edges2 = undirected([(i, i + 1) for i in range(n2 - 1)]
                        + [(0, 6), (1, 8), (4, 11), (2, 10)])
    a1 = dense_gcn_adj(edges1, n1)
    a2 = dense_gcn_adj(edges2, n2)

    x1 = jax.random.normal(k_x1, (n1, NUM_LABELS), jnp.float32)
    x2 = jax.random.normal(k_x2, (n2, NUM_LABELS), jnp.float32)

    fwd = jax.jit(functools.partial(grasp_forward, n1=n1, n2=n2))
    score = jax.block_until_ready(fwd(params, x1, a1, x2, a2))

    assert score.shape == (1,) and bool(jnp.all(jnp.isfinite(score)))
    print("KERNEL_OK")
</pallas_src>

<mosaic_0001>
module attributes {stable_mosaic.version = 11 : i64} {
  func.func @grasp_kernel(%arg0: memref<2xf32, #tpu.memory_space<smem>>, %arg1: memref<32x8xbf16, #tpu.memory_space<vmem>>, %arg2: memref<32x32xbf16, #tpu.memory_space<vmem>>, %arg3: memref<32x1xf32, #tpu.memory_space<vmem>>, %arg4: memref<2x32xbf16, #tpu.memory_space<vmem>>, %arg5: memref<2x1xf32, #tpu.memory_space<vmem>>, %arg6: memref<8x32xbf16, #tpu.memory_space<vmem>>, %arg7: memref<1x32xf32, #tpu.memory_space<vmem>>, %arg8: memref<3x32x32xbf16, #tpu.memory_space<vmem>>, %arg9: memref<3x1x32xf32, #tpu.memory_space<vmem>>, %arg10: memref<128x128xbf16, #tpu.memory_space<vmem>>, %arg11: memref<1x128xf32, #tpu.memory_space<vmem>>, %arg12: memref<128x32xbf16, #tpu.memory_space<vmem>>, %arg13: memref<1x32xf32, #tpu.memory_space<vmem>>, %arg14: memref<32x32xbf16, #tpu.memory_space<vmem>>, %arg15: memref<1x32xf32, #tpu.memory_space<vmem>>, %arg16: memref<64x512xbf16, #tpu.memory_space<vmem>>, %arg17: memref<512x16xbf16, #tpu.memory_space<vmem>>, %arg18: memref<64x16xbf16, #tpu.memory_space<vmem>>, %arg19: memref<1x16xf32, #tpu.memory_space<vmem>>, %arg20: memref<16x16xbf16, #tpu.memory_space<vmem>>, %arg21: memref<1x16xf32, #tpu.memory_space<vmem>>, %arg22: memref<16x1xbf16, #tpu.memory_space<vmem>>, %arg23: memref<1x1xf32, #tpu.memory_space<vmem>>, %arg24: memref<1x1xf32, #tpu.memory_space<vmem>>) attributes {dimension_semantics = [], scalar_prefetch = 0 : i64, scratch_operands = 0 : i64, tpu.core_type = #tpu.core_type<tc>} {
    %c0 = arith.constant 0 : index
    %0 = memref.load %arg0[%c0] : memref<2xf32, #tpu.memory_space<smem>>
    %c1 = arith.constant 1 : index
    %1 = memref.load %arg0[%c1] : memref<2xf32, #tpu.memory_space<smem>>
    %c0_0 = arith.constant 0 : index
    %c0_1 = arith.constant 0 : index
    %2 = vector.load %arg1[%c0_0, %c0_1] : memref<32x8xbf16, #tpu.memory_space<vmem>>, vector<32x8xbf16>
    %c0_2 = arith.constant 0 : index
    %c0_3 = arith.constant 0 : index
    %3 = vector.load %arg2[%c0_2, %c0_3] : memref<32x32xbf16, #tpu.memory_space<vmem>>, vector<32x32xbf16>
    %c0_4 = arith.constant 0 : index
    %c0_5 = arith.constant 0 : index
    %4 = vector.load %arg3[%c0_4, %c0_5] : memref<32x1xf32, #tpu.memory_space<vmem>>, vector<32x1xf32>
    %c0_6 = arith.constant 0 : index
    %c0_7 = arith.constant 0 : index
    %5 = vector.load %arg6[%c0_6, %c0_7] : memref<8x32xbf16, #tpu.memory_space<vmem>>, vector<8x32xbf16>
    %cst = arith.constant dense<0.000000e+00> : vector<32x32xf32>
    %6 = tpu.matmul %2, %5, %cst {dimension_numbers = #tpu.dot_dimension_numbers<[1], [0], [0], [1], [0, 0, 1, 1], [], []>} : vector<32x8xbf16>, vector<8x32xbf16>, vector<32x32xf32> -> vector<32x32xf32>
    %c0_8 = arith.constant 0 : index
    %c0_9 = arith.constant 0 : index
    %7 = vector.load %arg7[%c0_8, %c0_9] : memref<1x32xf32, #tpu.memory_space<vmem>>, vector<1x32xf32>
    %8 = vector.broadcast %7 : vector<1x32xf32> to vector<32x32xf32>
    %9 = arith.addf %6, %8 : vector<32x32xf32>
    %10 = vector.broadcast %4 : vector<32x1xf32> to vector<32x32xf32>
    %11 = arith.mulf %9, %10 : vector<32x32xf32>
    %cst_10 = arith.constant 1.000000e+00 : f32
    %12 = arith.addf %cst_10, %0 : f32
    %13 = vector.broadcast %12 : f32 to vector<32x32xf32>
    %14 = arith.mulf %11, %13 : vector<32x32xf32>
    %15 = arith.truncf %11 : vector<32x32xf32> to vector<32x32xbf16>
    %c0_11 = arith.constant 0 : index
    %c0_12 = arith.constant 0 : index
    %c0_13 = arith.constant 0 : index
    %16 = vector.load %arg8[%c0_11, %c0_12, %c0_13] : memref<3x32x32xbf16, #tpu.memory_space<vmem>>, vector<1x32x32xbf16>
    %17 = vector.shape_cast %16 : vector<1x32x32xbf16> to vector<32x32xbf16>
    %cst_14 = arith.constant dense<0.000000e+00> : vector<32x32xf32>
    %18 = tpu.matmul %15, %17, %cst_14 {dimension_numbers = #tpu.dot_dimension_numbers<[1], [0], [0], [1], [0, 0, 1, 1], [], []>} : vector<32x32xbf16>, vector<32x32xbf16>, vector<32x32xf32> -> vector<32x32xf32>
    %19 = arith.truncf %18 : vector<32x32xf32> to vector<32x32xbf16>
    %cst_15 = arith.constant dense<0.000000e+00> : vector<32x32xf32>
    %20 = tpu.matmul %3, %19, %cst_15 {dimension_numbers = #tpu.dot_dimension_numbers<[1], [0], [0], [1], [0, 0, 1, 1], [], []>} : vector<32x32xbf16>, vector<32x32xbf16>, vector<32x32xf32> -> vector<32x32xf32>
    %c0_16 = arith.constant 0 : index
    %c0_17 = arith.constant 0 : index
    %c0_18 = arith.constant 0 : index
    %21 = vector.load %arg9[%c0_16, %c0_17, %c0_18] : memref<3x1x32xf32, #tpu.memory_space<vmem>>, vector<1x1x32xf32>
    %22 = vector.shape_cast %21 : vector<1x1x32xf32> to vector<1x32xf32>
    %23 = vector.broadcast %22 : vector<1x32xf32> to vector<32x32xf32>
    %24 = arith.addf %20, %23 : vector<32x32xf32>
    %cst_19 = arith.constant 0.000000e+00 : f32
    %25 = vector.broadcast %cst_19 : f32 to vector<32x32xf32>
    %26 = arith.maximumf %24, %25 : vector<32x32xf32>
    %27 = arith.addf %26, %11 : vector<32x32xf32>
    %28 = arith.truncf %27 : vector<32x32xf32> to vector<32x32xbf16>
    %c1_20 = arith.constant 1 : index
    %c0_21 = arith.constant 0 : index
    %c0_22 = arith.constant 0 : index
    %29 = vector.load %arg8[%c1_20, %c0_21, %c0_22] : memref<3x32x32xbf16, #tpu.memory_space<vmem>>, vector<1x32x32xbf16>
    %30 = vector.shape_cast %29 : vector<1x32x32xbf16> to vector<32x32xbf16>
    %cst_23 = arith.constant dense<0.000000e+00> : vector<32x32xf32>
    %31 = tpu.matmul %28, %30, %cst_23 {dimension_numbers = #tpu.dot_dimension_numbers<[1], [0], [0], [1], [0, 0, 1, 1], [], []>} : vector<32x32xbf16>, vector<32x32xbf16>, vector<32x32xf32> -> vector<32x32xf32>
    %32 = arith.truncf %31 : vector<32x32xf32> to vector<32x32xbf16>
    %cst_24 = arith.constant dense<0.000000e+00> : vector<32x32xf32>
    %33 = tpu.matmul %3, %32, %cst_24 {dimension_numbers = #tpu.dot_dimension_numbers<[1], [0], [0], [1], [0, 0, 1, 1], [], []>} : vector<32x32xbf16>, vector<32x32xbf16>, vector<32x32xf32> -> vector<32x32xf32>
    %c1_25 = arith.constant 1 : index
    %c0_26 = arith.constant 0 : index
    %c0_27 = arith.constant 0 : index
    %34 = vector.load %arg9[%c1_25, %c0_26, %c0_27] : memref<3x1x32xf32, #tpu.memory_space<vmem>>, vector<1x1x32xf32>
    %35 = vector.shape_cast %34 : vector<1x1x32xf32> to vector<1x32xf32>
    %36 = vector.broadcast %35 : vector<1x32xf32> to vector<32x32xf32>
    %37 = arith.addf %33, %36 : vector<32x32xf32>
    %cst_28 = arith.constant 0.000000e+00 : f32
    %38 = vector.broadcast %cst_28 : f32 to vector<32x32xf32>
    %39 = arith.maximumf %37, %38 : vector<32x32xf32>
    %40 = arith.addf %39, %27 : vector<32x32xf32>
    %41 = arith.truncf %40 : vector<32x32xf32> to vector<32x32xbf16>
    %c2 = arith.constant 2 : index
    %c0_29 = arith.constant 0 : index
    %c0_30 = arith.constant 0 : index
    %42 = vector.load %arg8[%c2, %c0_29, %c0_30] : memref<3x32x32xbf16, #tpu.memory_space<vmem>>, vector<1x32x32xbf16>
    %43 = vector.shape_cast %42 : vector<1x32x32xbf16> to vector<32x32xbf16>
    %cst_31 = arith.constant dense<0.000000e+00> : vector<32x32xf32>
    %44 = tpu.matmul %41, %43, %cst_31 {dimension_numbers = #tpu.dot_dimension_numbers<[1], [0], [0], [1], [0, 0, 1, 1], [], []>} : vector<32x32xbf16>, vector<32x32xbf16>, vector<32x32xf32> -> vector<32x32xf32>
    %45 = arith.truncf %44 : vector<32x32xf32> to vector<32x32xbf16>
    %cst_32 = arith.constant dense<0.000000e+00> : vector<32x32xf32>
    %46 = tpu.matmul %3, %45, %cst_32 {dimension_numbers = #tpu.dot_dimension_numbers<[1], [0], [0], [1], [0, 0, 1, 1], [], []>} : vector<32x32xbf16>, vector<32x32xbf16>, vector<32x32xf32> -> vector<32x32xf32>
    %c2_33 = arith.constant 2 : index
    %c0_34 = arith.constant 0 : index
    %c0_35 = arith.constant 0 : index
    %47 = vector.load %arg9[%c2_33, %c0_34, %c0_35] : memref<3x1x32xf32, #tpu.memory_space<vmem>>, vector<1x1x32xf32>
    %48 = vector.shape_cast %47 : vector<1x1x32xf32> to vector<1x32xf32>
    %49 = vector.broadcast %48 : vector<1x32xf32> to vector<32x32xf32>
    %50 = arith.addf %46, %49 : vector<32x32xf32>
    %51 = tpu.concatenate %14, %27, %40, %50 in 1 : vector<32x32xf32>, vector<32x32xf32>, vector<32x32xf32>, vector<32x32xf32> -> vector<32x128xf32>
    %52 = arith.truncf %51 : vector<32x128xf32> to vector<32x128xbf16>
    %c0_36 = arith.constant 0 : index
    %c0_37 = arith.constant 0 : index
    %53 = vector.load %arg4[%c0_36, %c0_37] : memref<2x32xbf16, #tpu.memory_space<vmem>>, vector<2x32xbf16>
    %c0_38 = arith.constant 0 : index
    %c0_39 = arith.constant 0 : index
    %54 = vector.load %arg5[%c0_38, %c0_39] : memref<2x1xf32, #tpu.memory_space<vmem>>, vector<2x1xf32>
    %c0_40 = arith.constant 0 : index
    %c0_41 = arith.constant 0 : index
    %55 = vector.load %arg11[%c0_40, %c0_41] : memref<1x128xf32, #tpu.memory_space<vmem>>, vector<1x128xf32>
    %cst_42 = arith.constant dense<0.000000e+00> : vector<2x128xf32>
    %56 = tpu.matmul %53, %52, %cst_42 {dimension_numbers = #tpu.dot_dimension_numbers<[1], [0], [0], [1], [0, 0, 1, 1], [], []>} : vector<2x32xbf16>, vector<32x128xbf16>, vector<2x128xf32> -> vector<2x128xf32>
    %57 = vector.broadcast %54 : vector<2x1xf32> to vector<2x128xf32>
    %58 = arith.mulf %56, %57 : vector<2x128xf32>
    %59 = arith.truncf %58 : vector<2x128xf32> to vector<2x128xbf16>
    %c0_43 = arith.constant 0 : index
    %c0_44 = arith.constant 0 : index
    %60 = vector.load %arg10[%c0_43, %c0_44] : memref<128x128xbf16, #tpu.memory_space<vmem>>, vector<128x128xbf16>
    %cst_45 = arith.constant dense<0.000000e+00> : vector<2x128xf32>
    %61 = tpu.matmul %59, %60, %cst_45 {dimension_numbers = #tpu.dot_dimension_numbers<[1], [0], [0], [1], [0, 0, 1, 1], [], []>} : vector<2x128xbf16>, vector<128x128xbf16>, vector<2x128xf32> -> vector<2x128xf32>
    %62 = math.tanh %61 : vector<2x128xf32>
    %63 = tpu.iota {dimensions = array<i32: 0>} : vector<32x1xi32>
    %c16_i32 = arith.constant 16 : i32
    %64 = vector.broadcast %c16_i32 : i32 to vector<32x1xi32>
    %65 = arith.cmpi slt, %63, %64 : vector<32x1xi32>
    %66 = arith.extui %65 : vector<32x1xi1> to vector<32x1xi32>
    %67 = arith.sitofp %66 : vector<32x1xi32> to vector<32x1xf32>
    %68 = vector.extract_strided_slice %62 {offsets = [0, 0], sizes = [1, 128], strides = [1, 1]} : vector<2x128xf32> to vector<1x128xf32>
    %69 = vector.broadcast %67 : vector<32x1xf32> to vector<32x128xf32>
    %70 = vector.broadcast %68 : vector<1x128xf32> to vector<32x128xf32>
    %71 = arith.mulf %69, %70 : vector<32x128xf32>
    %cst_46 = arith.constant 1.000000e+00 : f32
    %72 = vector.broadcast %cst_46 : f32 to vector<32x1xf32>
    %73 = arith.subf %72, %67 : vector<32x1xf32>
    %74 = vector.extract_strided_slice %62 {offsets = [1, 0], sizes = [1, 128], strides = [1, 1]} : vector<2x128xf32> to vector<1x128xf32>
    %75 = vector.broadcast %73 : vector<32x1xf32> to vector<32x128xf32>
    %76 = vector.broadcast %74 : vector<1x128xf32> to vector<32x128xf32>
    %77 = arith.mulf %75, %76 : vector<32x128xf32>
    %78 = arith.addf %71, %77 : vector<32x128xf32>
    %79 = arith.mulf %51, %78 : vector<32x128xf32>
    %cst_47 = arith.constant dense<0.000000e+00> : vector<32xf32>
    %80 = vector.multi_reduction <add>, %79, %cst_47 [1] : vector<32x128xf32> to vector<32xf32>
    %81 = vector.shape_cast %80 : vector<32xf32> to vector<32x1xf32>
    %82 = arith.negf %81 : vector<32x1xf32>
    %83 = math.exp %82 : vector<32x1xf32>
    %cst_48 = arith.constant 1.000000e+00 : f32
    %84 = vector.broadcast %cst_48 : f32 to vector<32x1xf32>
    %85 = arith.addf %84, %83 : vector<32x1xf32>
    %86 = arith.divf %84, %85 : vector<32x1xf32>
    %87 = vector.broadcast %86 : vector<32x1xf32> to vector<32x128xf32>
    %88 = arith.mulf %87, %51 : vector<32x128xf32>
    %89 = arith.truncf %88 : vector<32x128xf32> to vector<32x128xbf16>
    %cst_49 = arith.constant dense<0.000000e+00> : vector<2x128xf32>
    %90 = tpu.matmul %53, %89, %cst_49 {dimension_numbers = #tpu.dot_dimension_numbers<[1], [0], [0], [1], [0, 0, 1, 1], [], []>} : vector<2x32xbf16>, vector<32x128xbf16>, vector<2x128xf32> -> vector<2x128xf32>
    %91 = vector.broadcast %55 : vector<1x128xf32> to vector<2x128xf32>
    %92 = arith.mulf %91, %90 : vector<2x128xf32>
    %cst_50 = arith.constant 1.000000e+00 : f32
    %93 = vector.broadcast %cst_50 : f32 to vector<1x128xf32>
    %94 = arith.subf %93, %55 : vector<1x128xf32>
    %95 = vector.broadcast %94 : vector<1x128xf32> to vector<2x128xf32>
    %96 = arith.mulf %95, %56 : vector<2x128xf32>
    %97 = arith.addf %92, %96 : vector<2x128xf32>
    %98 = arith.truncf %97 : vector<2x128xf32> to vector<2x128xbf16>
    %c0_51 = arith.constant 0 : index
    %c0_52 = arith.constant 0 : index
    %99 = vector.load %arg12[%c0_51, %c0_52] : memref<128x32xbf16, #tpu.memory_space<vmem>>, vector<128x32xbf16>
    %cst_53 = arith.constant dense<0.000000e+00> : vector<2x32xf32>
    %100 = tpu.matmul %98, %99, %cst_53 {dimension_numbers = #tpu.dot_dimension_numbers<[1], [0], [0], [1], [0, 0, 1, 1], [], []>} : vector<2x128xbf16>, vector<128x32xbf16>, vector<2x32xf32> -> vector<2x32xf32>
    %c0_54 = arith.constant 0 : index
    %c0_55 = arith.constant 0 : index
    %101 = vector.load %arg13[%c0_54, %c0_55] : memref<1x32xf32, #tpu.memory_space<vmem>>, vector<1x32xf32>
    %102 = vector.broadcast %101 : vector<1x32xf32> to vector<2x32xf32>
    %103 = arith.addf %100, %102 : vector<2x32xf32>
    %cst_56 = arith.constant 0.000000e+00 : f32
    %104 = vector.broadcast %cst_56 : f32 to vector<2x32xf32>
    %105 = arith.maximumf %103, %104 : vector<2x32xf32>
    %106 = arith.truncf %105 : vector<2x32xf32> to vector<2x32xbf16>
    %c0_57 = arith.constant 0 : index
    %c0_58 = arith.constant 0 : index
    %107 = vector.load %arg14[%c0_57, %c0_58] : memref<32x32xbf16, #tpu.memory_space<vmem>>, vector<32x32xbf16>
    %cst_59 = arith.constant dense<0.000000e+00> : vector<2x32xf32>
    %108 = tpu.matmul %106, %107, %cst_59 {dimension_numbers = #tpu.dot_dimension_numbers<[1], [0], [0], [1], [0, 0, 1, 1], [], []>} : vector<2x32xbf16>, vector<32x32xbf16>, vector<2x32xf32> -> vector<2x32xf32>
    %c0_60 = arith.constant 0 : index
    %c0_61 = arith.constant 0 : index
    %109 = vector.load %arg15[%c0_60, %c0_61] : memref<1x32xf32, #tpu.memory_space<vmem>>, vector<1x32xf32>
    %110 = vector.broadcast %109 : vector<1x32xf32> to vector<2x32xf32>
    %111 = arith.addf %108, %110 : vector<2x32xf32>
    %112 = vector.extract_strided_slice %111 {offsets = [0, 0], sizes = [1, 32], strides = [1, 1]} : vector<2x32xf32> to vector<1x32xf32>
    %113 = vector.extract_strided_slice %111 {offsets = [1, 0], sizes = [1, 32], strides = [1, 1]} : vector<2x32xf32> to vector<1x32xf32>
    %114 = tpu.iota {dimensions = array<i32: 0>} : vector<2x1xi32>
    %c0_i32 = arith.constant 0 : i32
    %115 = vector.broadcast %c0_i32 : i32 to vector<2x1xi32>
    %116 = arith.cmpi eq, %114, %115 : vector<2x1xi32>
    %117 = arith.extui %116 : vector<2x1xi1> to vector<2x1xi32>
    %118 = arith.sitofp %117 : vector<2x1xi32> to vector<2x1xf32>
    %119 = vector.broadcast %118 : vector<2x1xf32> to vector<2x32xf32>
    %120 = arith.mulf %111, %119 : vector<2x32xf32>
    %cst_62 = arith.constant 1.000000e+00 : f32
    %121 = vector.broadcast %cst_62 : f32 to vector<2x1xf32>
    %122 = arith.subf %121, %118 : vector<2x1xf32>
    %123 = vector.broadcast %122 : vector<2x1xf32> to vector<2x32xf32>
    %124 = arith.mulf %111, %123 : vector<2x32xf32>
    %125 = tpu.concatenate %120, %124 in 1 : vector<2x32xf32>, vector<2x32xf32> -> vector<2x64xf32>
    %126 = arith.truncf %125 : vector<2x64xf32> to vector<2x64xbf16>
    %c0_63 = arith.constant 0 : index
    %c0_64 = arith.constant 0 : index
    %127 = vector.load %arg16[%c0_63, %c0_64] : memref<64x512xbf16, #tpu.memory_space<vmem>>, vector<64x512xbf16>
    %cst_65 = arith.constant dense<0.000000e+00> : vector<2x512xf32>
    %128 = tpu.matmul %126, %127, %cst_65 {dimension_numbers = #tpu.dot_dimension_numbers<[1], [0], [0], [1], [0, 0, 1, 1], [], []>} : vector<2x64xbf16>, vector<64x512xbf16>, vector<2x512xf32> -> vector<2x512xf32>
    %129 = vector.extract_strided_slice %128 {offsets = [0, 0], sizes = [1, 512], strides = [1, 1]} : vector<2x512xf32> to vector<1x512xf32>
    %130 = vector.extract_strided_slice %128 {offsets = [1, 0], sizes = [1, 512], strides = [1, 1]} : vector<2x512xf32> to vector<1x512xf32>
    %131 = arith.mulf %129, %130 : vector<1x512xf32>
    %132 = arith.truncf %131 : vector<1x512xf32> to vector<1x512xbf16>
    %c0_66 = arith.constant 0 : index
    %c0_67 = arith.constant 0 : index
    %133 = vector.load %arg17[%c0_66, %c0_67] : memref<512x16xbf16, #tpu.memory_space<vmem>>, vector<512x16xbf16>
    %cst_68 = arith.constant dense<0.000000e+00> : vector<1x16xf32>
    %134 = tpu.matmul %132, %133, %cst_68 {dimension_numbers = #tpu.dot_dimension_numbers<[1], [0], [0], [1], [0, 0, 1, 1], [], []>} : vector<1x512xbf16>, vector<512x16xbf16>, vector<1x16xf32> -> vector<1x16xf32>
    %c0_69 = arith.constant 0 : index
    %c0_70 = arith.constant 0 : index
    %135 = vector.load %arg18[%c0_69, %c0_70] : memref<64x16xbf16, #tpu.memory_space<vmem>>, vector<64x16xbf16>
    %cst_71 = arith.constant dense<0.000000e+00> : vector<2x16xf32>
    %136 = tpu.matmul %126, %135, %cst_71 {dimension_numbers = #tpu.dot_dimension_numbers<[1], [0], [0], [1], [0, 0, 1, 1], [], []>} : vector<2x64xbf16>, vector<64x16xbf16>, vector<2x16xf32> -> vector<2x16xf32>
    %137 = vector.extract_strided_slice %136 {offsets = [0, 0], sizes = [1, 16], strides = [1, 1]} : vector<2x16xf32> to vector<1x16xf32>
    %138 = vector.extract_strided_slice %136 {offsets = [1, 0], sizes = [1, 16], strides = [1, 1]} : vector<2x16xf32> to vector<1x16xf32>
    %139 = arith.addf %137, %138 : vector<1x16xf32>
    %140 = arith.addf %134, %139 : vector<1x16xf32>
    %c0_72 = arith.constant 0 : index
    %c0_73 = arith.constant 0 : index
    %141 = vector.load %arg19[%c0_72, %c0_73] : memref<1x16xf32, #tpu.memory_space<vmem>>, vector<1x16xf32>
    %142 = arith.addf %140, %141 : vector<1x16xf32>
    %cst_74 = arith.constant 0.000000e+00 : f32
    %143 = vector.broadcast %cst_74 : f32 to vector<1x16xf32>
    %144 = arith.maximumf %142, %143 : vector<1x16xf32>
    %145 = arith.truncf %144 : vector<1x16xf32> to vector<1x16xbf16>
    %c0_75 = arith.constant 0 : index
    %c0_76 = arith.constant 0 : index
    %146 = vector.load %arg20[%c0_75, %c0_76] : memref<16x16xbf16, #tpu.memory_space<vmem>>, vector<16x16xbf16>
    %cst_77 = arith.constant dense<0.000000e+00> : vector<1x16xf32>
    %147 = tpu.matmul %145, %146, %cst_77 {dimension_numbers = #tpu.dot_dimension_numbers<[1], [0], [0], [1], [0, 0, 1, 1], [], []>} : vector<1x16xbf16>, vector<16x16xbf16>, vector<1x16xf32> -> vector<1x16xf32>
    %c0_78 = arith.constant 0 : index
    %c0_79 = arith.constant 0 : index
    %148 = vector.load %arg21[%c0_78, %c0_79] : memref<1x16xf32, #tpu.memory_space<vmem>>, vector<1x16xf32>
    %149 = arith.addf %147, %148 : vector<1x16xf32>
    %cst_80 = arith.constant 0.000000e+00 : f32
    %150 = vector.broadcast %cst_80 : f32 to vector<1x16xf32>
    %151 = arith.maximumf %149, %150 : vector<1x16xf32>
    %152 = arith.truncf %151 : vector<1x16xf32> to vector<1x16xbf16>
    %c0_81 = arith.constant 0 : index
    %c0_82 = arith.constant 0 : index
    %153 = vector.load %arg22[%c0_81, %c0_82] : memref<16x1xbf16, #tpu.memory_space<vmem>>, vector<16x1xbf16>
    %cst_83 = arith.constant dense<0.000000e+00> : vector<1x1xf32>
    %154 = tpu.matmul %152, %153, %cst_83 {dimension_numbers = #tpu.dot_dimension_numbers<[1], [0], [0], [1], [0, 0, 1, 1], [], []>} : vector<1x16xbf16>, vector<16x1xbf16>, vector<1x1xf32> -> vector<1x1xf32>
    %c0_84 = arith.constant 0 : index
    %c0_85 = arith.constant 0 : index
    %155 = vector.load %arg23[%c0_84, %c0_85] : memref<1x1xf32, #tpu.memory_space<vmem>>, vector<1x1xf32>
    %156 = arith.addf %154, %155 : vector<1x1xf32>
    %157 = arith.subf %112, %113 : vector<1x32xf32>
    %158 = arith.mulf %157, %157 : vector<1x32xf32>
    %cst_86 = arith.constant dense<0.000000e+00> : vector<1xf32>
    %159 = vector.multi_reduction <add>, %158, %cst_86 [1] : vector<1x32xf32> to vector<1xf32>
    %160 = vector.shape_cast %159 : vector<1xf32> to vector<1x1xf32>
    %161 = math.sqrt %160 : vector<1x1xf32>
    %162 = arith.negf %156 : vector<1x1xf32>
    %163 = math.exp %162 : vector<1x1xf32>
    %cst_87 = arith.constant 1.000000e+00 : f32
    %164 = vector.broadcast %cst_87 : f32 to vector<1x1xf32>
    %165 = arith.addf %164, %163 : vector<1x1xf32>
    %166 = arith.divf %164, %165 : vector<1x1xf32>
    %167 = vector.broadcast %1 : f32 to vector<1x1xf32>
    %168 = arith.mulf %167, %166 : vector<1x1xf32>
    %cst_88 = arith.constant 1.000000e+00 : f32
    %169 = arith.subf %cst_88, %1 : f32
    %cst_89 = arith.constant 0.000000e+00 : f32
    %170 = vector.broadcast %cst_89 : f32 to vector<1x1xf32>
    %171 = arith.subf %170, %161 : vector<1x1xf32>
    %172 = arith.negf %171 : vector<1x1xf32>
    %173 = math.exp %172 : vector<1x1xf32>
    %cst_90 = arith.constant 1.000000e+00 : f32
    %174 = vector.broadcast %cst_90 : f32 to vector<1x1xf32>
    %175 = arith.addf %174, %173 : vector<1x1xf32>
    %176 = arith.divf %174, %175 : vector<1x1xf32>
    %177 = vector.broadcast %169 : f32 to vector<1x1xf32>
    %178 = arith.mulf %177, %176 : vector<1x1xf32>
    %179 = arith.addf %168, %178 : vector<1x1xf32>
    %c0_91 = arith.constant 0 : index
    %c0_92 = arith.constant 0 : index
    %180 = vector.load %arg24[%c0_91, %c0_92] : memref<1x1xf32, #tpu.memory_space<vmem>>, vector<1x1xf32>
    tpu.vector_store %arg24[%c0_91, %c0_92], %179 {strides = array<i32>} : memref<1x1xf32, #tpu.memory_space<vmem>>, vector<1x1xf32>,
    return
  }
}

</mosaic_0001>

<bundles_post_ra>
// kernel: grasp_forward.1
= control target key start
LH: loop header
LB: loop body
LE: loop exit
PB: predicated region body
PF: predicated region fallthrough
CT: control target
= control target key end

     0   :  { %s3112_s0 = inlined_call_operand.vmem [shape: f32[2], index: 0, kind: input, shape index: {}]   ;;  %s3113_s1 = inlined_call_operand.vmem [shape: bf16[32,8], index: 1, kind: input, shape index: {}]   ;;  %s3114_s2 = inlined_call_operand.vmem [shape: bf16[32,32], index: 2, kind: input, shape index: {}]   ;;  %s3115_s3 = inlined_call_operand.vmem [shape: f32[32,1], index: 3, kind: input, shape index: {}]   ;;  %s3116_s4 = inlined_call_operand.vmem [shape: bf16[2,32], index: 4, kind: input, shape index: {}]   ;;  %s3117_s5 = inlined_call_operand.vmem [shape: f32[2,1], index: 5, kind: input, shape index: {}]   ;;  %s3118_s6 = inlined_call_operand.vmem [shape: bf16[8,32], index: 6, kind: input, shape index: {}]   ;;  %s3119_s7 = inlined_call_operand.vmem [shape: f32[1,32], index: 7, kind: input, shape index: {}]   ;;  %s3120_s8 = inlined_call_operand.vmem [shape: bf16[3,32,32], index: 8, kind: input, shape index: {}]   ;;  %s3121_s9 = inlined_call_operand.vmem [shape: f32[3,1,32], index: 9, kind: input, shape index: {}]   ;;  %s3122_s10 = inlined_call_operand.vmem [shape: bf16[128,128], index: 10, kind: input, shape index: {}]   ;;  %s3123_s11 = inlined_call_operand.vmem [shape: f32[1,128], index: 11, kind: input, shape index: {}]   ;;  %s3124_s12 = inlined_call_operand.vmem [shape: bf16[128,32], index: 12, kind: input, shape index: {}]   ;;  %s3125_s13 = inlined_call_operand.vmem [shape: f32[1,32], index: 13, kind: input, shape index: {}]   ;;  %s3126_s14 = inlined_call_operand.vmem [shape: bf16[32,32], index: 14, kind: input, shape index: {}]   ;;  %s3127_s15 = inlined_call_operand.vmem [shape: f32[1,32], index: 15, kind: input, shape index: {}]   ;;  %s3128_s16 = inlined_call_operand.vmem [shape: bf16[64,512], index: 16, kind: input, shape index: {}]   ;;  %s3129_s17 = inlined_call_operand.vmem [shape: bf16[512,16], index: 17, kind: input, shape index: {}]   ;;  %s3130_s18 = inlined_call_operand.vmem [shape: bf16[64,16], index: 18, kind: input, shape index: {}]   ;;  %s3131_s19 = inlined_call_operand.vmem [shape: f32[1,16], index: 19, kind: input, shape index: {}]   ;;  %s3132_s20 = inlined_call_operand.vmem [shape: bf16[16,16], index: 20, kind: input, shape index: {}]   ;;  %s3133_s21 = inlined_call_operand.vmem [shape: f32[1,16], index: 21, kind: input, shape index: {}]   ;;  %s3134_s22 = inlined_call_operand.vmem [shape: bf16[16,1], index: 22, kind: input, shape index: {}]   ;;  %s3135_s23 = inlined_call_operand.<no memory space> [shape: f32[1,1], index: 23, kind: input, shape index: {}]   ;;  %s3136_s24 = inlined_call_operand.hbm [shape: f32[1,1], index: 24, kind: output, shape index: {}]  }
   0x1   :  { %3141 = sst [smem:[#allocation9_spill]] %s3112_s0  ;;  %v29_v0 = vstv %s3135_s23 }
   0x2   :  { %3142 = sst [smem:[#allocation10_spill]] %s3113_s1  ;;  %30 = vst [vmem:[#allocation2] sm:$0x1] %v29_v0 }
   0x3   :  { %3143 = sst [smem:[#allocation11_spill]] %s3114_s2 }
   0x4   :  { %3144 = sst [smem:[#allocation12_spill]] %s3115_s3 }
   0x5   :  { %3145 = sst [smem:[#allocation13_spill]] %s3116_s4 }
   0x6   :  { %3146 = sst [smem:[#allocation14_spill]] %s3117_s5 }
   0x7   :  { %3147 = sst [smem:[#allocation15_spill]] %s3118_s6 }
   0x8   :  { %3148 = sst [smem:[#allocation16_spill]] %s3119_s7 }
   0x9   :  { %3149 = sst [smem:[#allocation17_spill]] %s3120_s8 }
   0xa   :  { %31 = vsyncpa [#allocation5], 0 }
   0xb   :  { %32 = vsyncpa [#allocation4], 0  ;;  %s3150_s6 = sld [smem:[#allocation9_spill]] }
  0x11   :  { %s39_s2 = sshll.u32 %s3150_s6, 4  ;;  %s40_s2 = int_to_ptr.vmem [resolvable:$true] %s39_s2 }
  0x12   :  { %s2481_s29 = scalar_lea.vmem %s40_s2, 16  ;;  %p2486_p1 = scmp.lt.s32.totalorder %s40_s2, %s40_s2 }
  0x13   :  { %p2482_p0 = scmp.ne.s32.totalorder %s40_s2, %s2481_s29  ;;  %p2487_p2 = scmp.lt.s32.totalorder %s2481_s29, %s2481_s29 }
  0x15   :  { %p2488_p3 = por %p2487_p2, %p2486_p1 }
  0x17   :  { %p2489_p4 = pnand %p2488_p3, %p2482_p0 }
  0x19   :  { %2492 = shalt.err (!%p2489_p4)
}
  0x1a   :  { %s2519_s0 = smov [#allocation3]  }
  0x1b   :  { %42 = dma.vmem_to_smem %s40_s2, 16, %s2519_s0, [#allocation5]  }
  0x1c   :  { %2515 = dma.done.wait [#allocation5], 16  }
  0x1d   :  { %2516 = vsyncadd [#allocation5], 4294967280 }
  0x1e   :  { %92 = sfence }
  0x1f   :  { %s3151_s30 = sld [smem:[#allocation15_spill]]  ;;  %vm133_vm0 = vcmask 1043456   ;;  %s3152_s8 = sld [smem:[#allocation10_spill]]  ;;  %vm126_vm1 = vcmask 64512   ;;  %v2520_v6 = vmov 0   ;;  %vm234_vm2 = vcmask 261120  }
  0x20   :  { %s3153_s27 = sld [smem:[#allocation12_spill]]  ;;  %2361 = vset.pattern.permute.xlu0 %v2520_v6  ;;  %2362 = vset.pattern.permute.xlu1 %v2520_v6  ;;  %s3154_s3 = sld [smem:[#allocation17_spill]]  ;;  %v1985_v41 = vld [vmem:[%s3121_s9] ss:$0 sm:$0xff]  ;;  %vm2524_vm3 = vmmov 0   ;;  %vm703_vm4 = vcmask 785408  }
  0x21   :  { %s3155_s5 = sld [smem:[#allocation16_spill]]  ;;  %s3156_s28 = sld [smem:[#allocation11_spill]]  ;;  %vm698_vm5 = vcmask 523264   ;;  %vm1928_vm7 = vcmask 253952   ;;  %vm1825_vm8 = vcmask 130048   ;;  %vm1958_vm11 = vcmask 0  }
  0x22   :  { %s2525_s29 = smov 96   ;;  %s3157_s23 = sld [smem:[#allocation14_spill]] }
  0x23   :  { %s94_s0 = sld [smem:[#allocation3]]  ;;  %s3158_s25 = sld [smem:[#allocation13_spill]] }
  0x25   :  { %v108_v1 = vld [vmem:[%s3151_s30] sm:$0xf]  ;;  %v2364_v4 = vld [vmem:[%s3152_s8 + $0x8] sm:$0xff]  }
  0x26   :  { %v2363_v2 = vld [vmem:[%s3152_s8] sm:$0xff]   ;;  %2352 = vmatprep.subr.msk.bf16.mxu0 %vm133_vm0, %v108_v1  ;;  %v135_v3 = vsel %vm133_vm0, %v108_v1, 0  ;;  %v106_v7 = vld [vmem:[%s3153_s27 + $0x10] sm:$0xff]  ;;  %v105_v8 = vld [vmem:[%s3153_s27 + $0x8] sm:$0xff]  ;;  %s2521_s8 = smov 32  }
  0x27   :  { %2211 = vmatpush3.bf16.msra.mxu0 %v135_v3  ;;  %2212 = vmatprep.mubr.msk.bf16.mxu0 %vm126_vm1, %v2363_v2  ;;  %v104_v5 = vld [vmem:[%s3153_s27] sm:$0xff]  ;;  %v107_v9 = vld [vmem:[%s3153_s27 + $0x18] sm:$0xff]  ;;  %v2366_v11 = vld [vmem:[%s3154_s3 + $0x8] sm:$0xff]  }
  0x28   :  { %188 = vperm.xlu0 %2361, %v104_v5   ;;  %198 = vperm.xlu1 %2362, %v106_v7   ;;  %v2365_v10 = vld [vmem:[%s3154_s3] sm:$0xff]   ;;  %v2711_v38 = vld [vmem:[%s3156_s28 + $0x8] sm:$0xff]   ;;  %v2369_v39 = vld [vmem:[%s3154_s3 + $0x10] sm:$0xff]  }
  0x29   :  { %2216 = vmatprep.subr.bf16.mxu1 %v2365_v10  ;;  %v1976_v14 = vld [vmem:[%s3155_s5] ss:$0 sm:$0xff]  ;;  %v2370_v40 = vld [vmem:[%s3154_s3 + $0x18] sm:$0xff]   ;;  %v2372_v3 = vld [vmem:[%s3154_s3 + $0x28] sm:$0xff]  }
  0x2a   :  { %2213 = vmatmul.mubr.msk.bf16.vlgmr.msra.gmra.mrb[0].mxu0 %vm126_vm1, %v2364_v4  ;;  %2217 = vmatpush3.bf16.msra.mxu1 %v2365_v10  ;;  %v2367_v31 = vld [vmem:[%s3156_s28] sm:$0xff]  }
  0x2b   :  { %2218 = vmatprep.subr.bf16.mxu1 %v2366_v11  ;;  %2228 = vmatprep.mubr.msk.bf16.mxu0 %vm234_vm2, %v2367_v31  ;;  %v2371_v2 = vld [vmem:[%s3154_s3 + $0x20] sm:$0xff]   ;;  %s2522_s3 = smov 64  }
  0x2c   :  { %193 = vperm.xlu0 %2361, %v105_v8   ;;  %203 = vperm.xlu1 %2362, %v107_v9   ;;  %v1999_v4 = vld [vmem:[%s3121_s9 + $0x1] ss:$0 sm:$0xff] }
  0x2e   :  { %2219 = vmatpush3.bf16.msra.mxu1 %v2366_v11 }
  0x2f   :  { %2232 = vmatprep.subr.bf16.mxu1 %v2369_v39 }
  0xa7   :  { %v199_v12 = vpop.permute.xlu1 %198  ;;  %v189_v13 = vpop.permute.xlu0 %188 }
  0xab   :  { %v204_v22 = vpop.permute.xlu1 %203  ;;  %v194_v24 = vpop.permute.xlu0 %193 }
  0xfd   :  { %v2214_v15 = vpop.f32.mrb[0].mxu0 }
  0xfe   :  { %v171_v16 = vpop.f32.mrb[1].mxu0  ;;  %v180_v19 = vadd.f32 %v2214_v15, %v1976_v14 }
  0xff   :  { %v172_v17 = vadd.f32 %v1976_v14, %v171_v16  ;;  %v2215_v18 = vpop.f32.mrb[2].mxu0 }
 0x100   :  { %v183_v20 = vadd.f32 %v2215_v18, %v1976_v14  ;;  %v174_v21 = vpop.f32.mrb[3].mxu0  ;;  %v2696_v28 = vmul.f32 %v199_v12, %v180_v19 }
 0x101   :  { %v175_v23 = vadd.f32 %v1976_v14, %v174_v21  ;;  %v2692_v26 = vmul.f32 %v189_v13, %v172_v17 }
 0x102   :  { %v2690_v25 = vmul.f32 %v204_v22, %v183_v20 }
 0x103   :  { %v2694_v27 = vmul.f32 %v194_v24, %v175_v23 }
 0x104   :  { %v217_v30 = vpack.c.bf16 %v2690_v25, %v2696_v28 }
 0x105   :  { %v216_v29 = vpack.c.bf16 %v2694_v27, %v2692_v26 }
 0x107   :  { %2220 = vmatprep.mubr.msk.bf16.mxu1 %vm234_vm2, %v216_v29 }
 0x108   :  { %2221 = vmatmul.mubr.msk.bf16.vlgmr.msra.gmra.mrb[0].mxu1 %vm234_vm2, %v217_v30 }
 0x109   :  { %2233 = vmatpush3.bf16.msra.mxu1 %v2369_v39 }
 0x10a   :  { %2234 = vmatprep.subr.bf16.mxu1 %v2370_v40 }
 0x10d   :  { %2235 = vmatpush3.bf16.msra.mxu1 %v2370_v40 }
 0x10e   :  { %2248 = vmatprep.subr.bf16.mxu1 %v2371_v2 }
 0x1db   :  { %v2222_v32 = vpop.f32.mrb[0].mxu1 }
 0x1dc   :  { %v275_v33 = vpop.f32.mrb[1].mxu1 }
 0x1dd   :  { %v2223_v34 = vpop.f32.mrb[2].mxu1 }
 0x1de   :  { %v291_v35 = vpack.c.bf16 %v2223_v34, %v2222_v32  ;;  %v278_v36 = vpop.f32.mrb[3].mxu1  ;;  %v2523_v34 = vmov 0.0  }
 0x1df   :  { %v290_v37 = vpack.c.bf16 %v278_v36, %v275_v33 }
 0x1e1   :  { %2224 = vmatprep.subr.bf16.mxu0 %v290_v37 }
 0x1e2   :  { %2225 = vmatpush3.bf16.msra.mxu0 %v290_v37 }
 0x1e3   :  { %2226 = vmatprep.subr.bf16.mxu0 %v291_v35 }
 0x1e6   :  { %2227 = vmatpush3.bf16.msra.mxu0 %v291_v35  ;;  %v2011_v35 = vld [vmem:[%s3121_s9 + $0x2] ss:$0 sm:$0xff] }
 0x1e9   :  { %2229 = vmatmul.mubr.msk.bf16.vlgmr.msra.gmra.mrb[4].mxu0 %vm234_vm2, %v2711_v38 }
 0x1ea   :  { %2244 = vmatprep.mubr.msk.bf16.mxu0 %vm234_vm2, %v2367_v31 }
 0x2bc   :  { %v2230_v42 = vpop.f32.mrb[4].mxu0 }
 0x2bd   :  { %v358_v43 = vadd.f32 %v2230_v42, %v1985_v41  ;;  %v349_v44 = vpop.f32.mrb[5].mxu0 }
 0x2be   :  { %v350_v45 = vadd.f32 %v1985_v41, %v349_v44  ;;  %v2231_v46 = vpop.f32.mrb[6].mxu0  ;;  %v711_v44 = vld [vmem:[%s3157_s23] sm:$0x3]  ;;  %s210_s23 = sadd.f32 1.0, %s94_s0 }
 0x2bf   :  { %v366_v47 = vmax.f32 %v358_v43, 0.0  ;;  %v361_v48 = vadd.f32 %v2231_v46, %v1985_v41  ;;  %v352_v49 = vpop.f32.mrb[7].mxu0  ;;  %v2374_v46 = vld [vmem:[%s3122_s10 + $0x8] sm:$0xff]  }
 0x2c0   :  { %v364_v50 = vmax.f32 %v350_v45, 0.0  ;;  %v353_v51 = vadd.f32 %v1985_v41, %v352_v49  ;;  %v2373_v45 = vld [vmem:[%s3122_s10] sm:$0xff]  }
 0x2c1   :  { %v370_v52 = vadd.f32 %v366_v47, %v2696_v28  ;;  %v367_v53 = vmax.f32 %v361_v48, 0.0  ;;  %v2375_v47 = vld [vmem:[%s3122_s10 + $0x10] sm:$0xff]   ;;  %v2376_v48 = vld [vmem:[%s3122_s10 + $0x18] sm:$0xff]   ;;  %v2377_v49 = vld [vmem:[%s3122_s10 + $0x20] sm:$0xff]  }
 0x2c2   :  { %v365_v54 = vmax.f32 %v353_v51, 0.0  ;;  %v368_v56 = vadd.f32 %v364_v50, %v2692_v26  ;;  %v2378_v50 = vld [vmem:[%s3122_s10 + $0x28] sm:$0xff]   ;;  %v2379_v51 = vld [vmem:[%s3122_s10 + $0x30] sm:$0xff]  }
 0x2c3   :  { %v371_v55 = vadd.f32 %v367_v53, %v2690_v25  ;;  %654 = vrot.lane.b32.xlu0 %v370_v52, %s2521_s8 }
 0x2c4   :  { %v369_v57 = vadd.f32 %v365_v54, %v2694_v27 }
 0x2c5   :  { %656 = vrot.lane.b32.xlu1 %v371_v55, %s2521_s8  ;;  %v373_v59 = vpack.c.bf16 %v371_v55, %v370_v52 }
 0x2c6   :  { %v372_v58 = vpack.c.bf16 %v369_v57, %v368_v56 }
 0x2c7   :  { %650 = vrot.lane.b32.xlu0 %v368_v56, %s2521_s8 }
 0x2c8   :  { %2236 = vmatprep.mubr.msk.bf16.mxu1 %vm234_vm2, %v372_v58  ;;  %v211_v58 = vstv %s210_s23 }
 0x2c9   :  { %652 = vrot.lane.b32.xlu1 %v369_v57, %s2521_s8  ;;  %2237 = vmatmul.mubr.msk.bf16.vlgmr.msra.gmra.mrb[4].mxu1 %vm234_vm2, %v373_v59 }
 0x2ca   :  { %2249 = vmatpush3.bf16.msra.mxu1 %v2371_v2 }
 0x2cb   :  { %2250 = vmatprep.subr.bf16.mxu1 %v2372_v3 }
 0x2ce   :  { %2251 = vmatpush3.bf16.msra.mxu1 %v2372_v3 }
 0x2cf   :  { %2264 = vmatprep.subr.bf16.mxu1 %v2523_v34 }
 0x337   :  { %v657_v53 = vpop.permute.xlu1 %656 }
 0x39c   :  { %v2238_v60 = vpop.f32.mrb[4].mxu1 }
 0x39d   :  { %v431_v61 = vpop.f32.mrb[5].mxu1 }
 0x39e   :  { %v2239_v62 = vpop.f32.mrb[6].mxu1 }
 0x39f   :  { %v447_v63 = vpack.c.bf16 %v2239_v62, %v2238_v60  ;;  %v434_v0 = vpop.f32.mrb[7].mxu1  ;;  %v213_v62 = vmul.f32 %v211_v58, %v2694_v27 }
 0x3a0   :  { %v446_v1 = vpack.c.bf16 %v434_v0, %v431_v61  ;;  %v212_v61 = vmul.f32 %v211_v58, %v2692_v26 }
 0x3a2   :  { %2240 = vmatprep.subr.bf16.mxu0 %v446_v1 }
 0x3a3   :  { %2241 = vmatpush3.bf16.msra.mxu0 %v446_v1 }
 0x3a4   :  { %2242 = vmatprep.subr.bf16.mxu0 %v447_v63 }
 0x3a7   :  { %2243 = vmatpush3.bf16.msra.mxu0 %v447_v63 }
 0x3aa   :  { %2245 = vmatmul.mubr.msk.bf16.vlgmr.msra.gmra.mrb[8].mxu0 %vm234_vm2, %v2711_v38 }
 0x3ab   :  { %2260 = vmatprep.mubr.msk.bf16.mxu0 %vm234_vm2, %v2367_v31 }
 0x47d   :  { %v2246_v5 = vpop.f32.mrb[8].mxu0 }
 0x47e   :  { %v499_v7 = vadd.f32 %v2246_v5, %v1999_v4  ;;  %v490_v8 = vpop.f32.mrb[9].mxu0  ;;  %v214_v5 = vmul.f32 %v211_v58, %v2696_v28 }
 0x47f   :  { %v491_v9 = vadd.f32 %v1999_v4, %v490_v8  ;;  %v2247_v10 = vpop.f32.mrb[10].mxu0 }
 0x480   :  { %v507_v11 = vmax.f32 %v499_v7, 0.0  ;;  %v502_v12 = vadd.f32 %v2247_v10, %v1999_v4  ;;  %v493_v13 = vpop.f32.mrb[11].mxu0  ;;  %v215_v7 = vmul.f32 %v211_v58, %v2690_v25 }
 0x481   :  { %v505_v14 = vmax.f32 %v491_v9, 0.0  ;;  %v494_v15 = vadd.f32 %v1999_v4, %v493_v13 }
 0x482   :  { %v511_v16 = vadd.f32 %v507_v11, %v370_v52  ;;  %v508_v17 = vmax.f32 %v502_v12, 0.0  ;;  %v655_v52 = vpop.permute.xlu0 %654  ;;  %v697_v11 = vsel %vm234_vm2, %v215_v7, %v657_v53 }
 0x483   :  { %v506_v18 = vmax.f32 %v494_v15, 0.0  ;;  %v509_v20 = vadd.f32 %v505_v14, %v368_v56  ;;  %v696_v10 = vsel %vm234_vm2, %v214_v5, %v655_v52 }
 0x484   :  { %v512_v19 = vadd.f32 %v508_v17, %v371_v55  ;;  %670 = vrot.lane.b32.xlu0 %v511_v16, %s2522_s3  ;;  %v653_v55 = vpop.permute.xlu1 %652  ;;  %v2380_v17 = vld [vmem:[%s3122_s10 + $0x38] sm:$0xff]  }
 0x485   :  { %v510_v21 = vadd.f32 %v506_v18, %v369_v57  ;;  %v695_v1 = vsel %vm234_vm2, %v213_v62, %v653_v55 }
 0x486   :  { %v514_v22 = vpack.c.bf16 %v512_v19, %v511_v16  ;;  %672 = vrot.lane.b32.xlu1 %v512_v19, %s2522_s3  ;;  %v651_v54 = vpop.permute.xlu0 %650  ;;  %v2823_v16 = vld [vmem:[%s3158_s25] sm:$0x1] }
 0x487   :  { %v513_v23 = vpack.c.bf16 %v510_v21, %v509_v20  ;;  %v694_v0 = vsel %vm234_vm2, %v212_v61, %v651_v54 }
 0x488   :  { %666 = vrot.lane.b32.xlu0 %v509_v20, %s2522_s3 }
 0x489   :  { %2252 = vmatprep.mubr.msk.bf16.mxu1 %vm234_vm2, %v513_v23 }
 0x48a   :  { %668 = vrot.lane.b32.xlu1 %v510_v21, %s2522_s3  ;;  %2253 = vmatmul.mubr.msk.bf16.vlgmr.msra.gmra.mrb[8].mxu1 %vm234_vm2, %v514_v22 }
 0x48b   :  { %2268 = vmatprep.mubr.msk.bf16.mxu1 %vm2524_vm3, %v2523_v34 }
 0x4f6   :  { %v671_v56 = vpop.permute.xlu0 %670 }
 0x4f7   :  { %v701_v12 = vsel %vm698_vm5, %v696_v10, %v671_v56 }
 0x4f8   :  { %v673_v57 = vpop.permute.xlu1 %672 }
 0x4f9   :  { %v702_v28 = vsel %vm698_vm5, %v697_v11, %v673_v57 }
 0x4fa   :  { %v667_v59 = vpop.permute.xlu0 %666 }
 0x4fb   :  { %v699_v2 = vsel %vm698_vm5, %v694_v0, %v667_v59 }
 0x4fc   :  { %v669_v60 = vpop.permute.xlu1 %668 }
 0x4fd   :  { %v700_v3 = vsel %vm698_vm5, %v695_v1, %v669_v60 }
 0x55d   :  { %v2254_v24 = vpop.f32.mrb[8].mxu1 }
 0x55e   :  { %v572_v29 = vpop.f32.mrb[9].mxu1 }
 0x55f   :  { %v2255_v30 = vpop.f32.mrb[10].mxu1 }
 0x560   :  { %v588_v31 = vpack.c.bf16 %v2255_v30, %v2254_v24  ;;  %v575_v32 = vpop.f32.mrb[11].mxu1 }
 0x561   :  { %v587_v33 = vpack.c.bf16 %v575_v32, %v572_v29 }
 0x563   :  { %2256 = vmatprep.subr.bf16.mxu0 %v587_v33 }
 0x564   :  { %2257 = vmatpush3.bf16.msra.mxu0 %v587_v33 }
 0x565   :  { %2258 = vmatprep.subr.bf16.mxu0 %v588_v31 }
 0x568   :  { %2259 = vmatpush3.bf16.msra.mxu0 %v588_v31  ;;  %v868_v31 = vlaneseq }
 0x569   :  { %2272 = vmatprep.subr.bf16.mxu0 %v2523_v34 }
 0x56b   :  { %2261 = vmatmul.mubr.msk.bf16.vlgmr.msra.gmra.mrb[12].mxu0 %vm234_vm2, %v2711_v38 }
 0x56c   :  { %2288 = vmatprep.mubr.msk.bf16.mxu0 %vm2524_vm3, %v2523_v34  ;;  %2273 = vmatpush3.bf16.msra.mxu0 %v2373_v45 }
 0x56d   :  { %2274 = vmatprep.subr.bf16.mxu0 %v2523_v34 }
 0x570   :  { %2275 = vmatpush3.bf16.msra.mxu0 %v2374_v46 }
 0x571   :  { %2276 = vmatprep.subr.bf16.mxu0 %v2523_v34 }
 0x574   :  { %2277 = vmatpush3.bf16.msra.mxu0 %v2375_v47 }
 0x575   :  { %2278 = vmatprep.subr.bf16.mxu0 %v2523_v34 }
 0x578   :  { %2279 = vmatpush3.bf16.msra.mxu0 %v2376_v48 }
 0x579   :  { %2280 = vmatprep.subr.bf16.mxu0 %v2523_v34 }
 0x57c   :  { %2281 = vmatpush3.bf16.msra.mxu0 %v2377_v49 }
 0x57d   :  { %2282 = vmatprep.subr.bf16.mxu0 %v2523_v34 }
 0x580   :  { %2283 = vmatpush3.bf16.msra.mxu0 %v2378_v50 }
 0x581   :  { %2284 = vmatprep.subr.bf16.mxu0 %v2523_v34 }
 0x584   :  { %2285 = vmatpush3.bf16.msra.mxu0 %v2379_v51 }
 0x585   :  { %2286 = vmatprep.subr.bf16.mxu0 %v2523_v34 }
 0x588   :  { %2287 = vmatpush3.bf16.msra.mxu0 %v2380_v17 }
 0x589   :  { %2320 = vmatprep.subr.bf16.mxu0 %v2523_v34 }
 0x63e   :  { %v2262_v36 = vpop.f32.mrb[12].mxu0 }
 0x63f   :  { %v631_v37 = vpop.f32.mrb[13].mxu0  ;;  %v640_v42 = vadd.f32 %v2262_v36, %v2011_v35 }
 0x640   :  { %v632_v39 = vadd.f32 %v2011_v35, %v631_v37  ;;  %v2263_v38 = vpop.f32.mrb[14].mxu0 }
 0x641   :  { %v634_v40 = vpop.f32.mrb[15].mxu0  ;;  %v643_v43 = vadd.f32 %v2263_v38, %v2011_v35 }
 0x642   :  { %v635_v41 = vadd.f32 %v2011_v35, %v634_v40  ;;  %682 = vrot.lane.b32.xlu0 %v632_v39, %s2525_s29  ;;  %v2839_v35 = vshrl.u32 %v868_v31, 7 }
 0x644   :  { %684 = vrot.lane.b32.xlu1 %v635_v41, %s2525_s29  ;;  %v899_v36 = vsub.s32 1, %v2839_v35  ;;  %v2843_v37 = vsub.s32 0, %v2839_v35  ;;  %vm1187_vm6 = vcmp.eq.s32.totalorder %v2839_v35, 0 }
 0x646   :  { %686 = vrot.lane.b32.xlu0 %v640_v42, %s2525_s29 }
 0x648   :  { %688 = vrot.lane.b32.xlu1 %v643_v43, %s2525_s29 }
 0x64a   :  { %758 = vperm.xlu0 %2361, %v711_v44  }
 0x6b4   :  { %v683_v63 = vpop.permute.xlu0 %682 }
 0x6b5   :  { %v2800_v26 = vsel %vm703_vm4, %v699_v2, %v683_v63 }
 0x6b6   :  { %v685_v4 = vpop.permute.xlu1 %684 }
 0x6b7   :  { %v2803_v27 = vsel %vm703_vm4, %v700_v3, %v685_v4 }
 0x6b8   :  { %v708_v8 = vpack.c.bf16 %v2803_v27, %v2800_v26  ;;  %v687_v9 = vpop.permute.xlu0 %686 }
 0x6b9   :  { %v2812_v25 = vsel %vm703_vm4, %v701_v12, %v687_v9  ;;  %v2381_v12 = vld [vmem:[%s3124_s12] sm:$0xff]  }
 0x6ba   :  { %v689_v13 = vpop.permute.xlu1 %688  ;;  %2265 = vmatpush3.bf16.msra.mxu1 %v708_v8 }
 0x6bb   :  { %v2815_v14 = vsel %vm703_vm4, %v702_v28, %v689_v13  ;;  %2266 = vmatprep.subr.bf16.mxu1 %v2523_v34  ;;  %v2384_v28 = vld [vmem:[%s3124_s12 + $0x18] sm:$0xff]   ;;  %v2385_v13 = vld [vmem:[%s3124_s12 + $0x20] sm:$0xff]  }
 0x6bc   :  { %v709_v15 = vpack.c.bf16 %v2815_v14, %v2812_v25 }
 0x6be   :  { %2267 = vmatpush3.bf16.msra.mxu1 %v709_v15  ;;  %v2388_v15 = vld [vmem:[%s3124_s12 + $0x38] sm:$0xff]  }
 0x6bf   :  { %2292 = vmatprep.subr.bf16.mxu1 %v2523_v34 }
 0x6c1   :  { %2269 = vmatmul.mubr.msk.bf16.vlgmr.msra.gmra.mrb[12].mxu1 %vm234_vm2, %v2823_v16 }
 0x6c2   :  { %2296 = vmatprep.mubr.msk.bf16.mxu1 %vm2524_vm3, %v2523_v34 }
 0x6c9   :  { %v759_v18 = vpop.permute.xlu0 %758 }
 0x794   :  { %v2834_v19 = vpop.f32.mrb[12].mxu1 }
 0x795   :  { %v761_v20 = vmul.f32 %v759_v18, %v2834_v19  ;;  %v2270_v21 = vpop.f32.mrb[13].mxu1 }
 0x796   :  { %v753_v22 = vpop.f32.mrb[14].mxu1 }
 0x797   :  { %v762_v23 = vpack.c.bf16 %v761_v20, %v761_v20  ;;  %v2271_v24 = vpop.f32.mrb[15].mxu1 }
 0x799   :  { %2289 = vmatmul.mubr.bf16.vlgmr.msra.gmra.mrb[16].mxu0 %v762_v23 }
 0x79a   :  { %2324 = vmatprep.mubr.msk.bf16.mxu0 %vm2524_vm3, %v2523_v34 }
 0x86c   :  { %v861_v29 = vpop.f32.mrb[16].mxu0 }
 0x86d   :  { %2453 = vtanh.f32 %v861_v29  ;;  %v2290_v30 = vpop.f32.mrb[17].mxu0 }
 0x86e   :  { %v864_v32 = vpop.f32.mrb[18].mxu0 }
 0x86f   :  { %v2291_v33 = vpop.f32.mrb[19].mxu0 }
 0x870   :  { %v2389_v33 = vld [vmem:[%s3126_s14] sm:$0xff]  }
 0x871   :  { %2321 = vmatpush3.bf16.msra.mxu0 %v2389_v33  ;;  %v2441_v33 = vld [vmem:[%s3129_s17 + $0x28] sm:$0xff]  }
 0x872   :  { %2322 = vmatprep.subr.bf16.mxu0 %v2523_v34 }
 0x877   :  { %v2454_v39 = vpop.eup %2453 }
 0x878   :  { %v888_v38 = vrot.slane %v2454_v39, %v2843_v37  ;;  %v900_v40 = vrot.slane %v2454_v39, %v899_v36  ;;  %v2028_v36 = vld [vmem:[%s3125_s13] ss:$0 sm:$0xff] }
 0x87a   :  { %v901_v41 = vmul.f32 0.0, %v900_v40  ;;  %v891_v42 = vmul.f32 0.0, %v888_v38 }
 0x87c   :  { %v905_v43 = vadd.f32 %v901_v41, %v888_v38  ;;  %v907_v46 = vadd.f32 %v900_v40, %v891_v42 }
 0x87e   :  { %v910_v44 = vmul.f32 %v905_v43, %v2803_v27  ;;  %v909_v45 = vmul.f32 %v905_v43, %v2800_v26  ;;  %v912_v47 = vmul.f32 %v907_v46, %v2815_v14  ;;  %v911_v48 = vmul.f32 %v907_v46, %v2812_v25  ;;  %v2394_v46 = vld [vmem:[%s3128_s16 + $0x8] ss:$16 sps:$4 sm:$0xff]  }
 0x880   :  { %915 = vadd.xlane.f32.xlu0 %v910_v44  ;;  %913 = vadd.xlane.f32.xlu1 %v909_v45  ;;  %v2391_v44 = vld [vmem:[%s3128_s16] ss:$16 sps:$4 sm:$0xff]   ;;  %v2393_v45 = vld [vmem:[%s3128_s16 + $0x4] ss:$16 sps:$4 sm:$0xff]  }
 0x884   :  { %919 = vadd.xlane.f32.xlu1 %v912_v47  ;;  %917 = vadd.xlane.f32.xlu0 %v911_v48  ;;  %v2396_v47 = vld [vmem:[%s3128_s16 + $0xc] ss:$16 sps:$4 sm:$0xff]  }
 0x885   :  { %v2402_v48 = vld [vmem:[%s3128_s16 + $0x2c] ss:$16 sps:$4 sm:$0xff]  }
 0x90d   :  { %v916_v49 = vpop.xlane.xlu0 %915  ;;  %v914_v50 = vpop.xlane.xlu1 %913 }
 0x90e   :  { %v2024_v51 = vmul.f32 -1.442695, %v916_v49  ;;  %v2023_v52 = vmul.f32 -1.442695, %v914_v50  ;;  %v2397_v49 = vld [vmem:[%s3128_s16 + $0x20] ss:$16 sps:$4 sm:$0xff]  }
 0x90f   :  { %v2400_v50 = vld [vmem:[%s3128_s16 + $0x28] ss:$16 sps:$4 sm:$0xff]  }
 0x910   :  { %2455 = vpow2.f32 %v2024_v51  ;;  %v2405_v51 = vld [vmem:[%s3128_s16 + $0x44] ss:$16 sps:$4 sm:$0xff]  }
 0x911   :  { %2457 = vpow2.f32 %v2023_v52  ;;  %v920_v53 = vpop.xlane.xlu1 %919  ;;  %v918_v54 = vpop.xlane.xlu0 %917  ;;  %v2408_v52 = vld [vmem:[%s3128_s16 + $0x4c] ss:$16 sps:$4 sm:$0xff]  }
 0x912   :  { %v2026_v55 = vmul.f32 -1.442695, %v920_v53  ;;  %v2025_v56 = vmul.f32 -1.442695, %v918_v54  ;;  %v2403_v53 = vld [vmem:[%s3128_s16 + $0x40] ss:$16 sps:$4 sm:$0xff]  }
 0x913   :  { %v2406_v54 = vld [vmem:[%s3128_s16 + $0x48] ss:$16 sps:$4 sm:$0xff]  }
 0x914   :  { %2459 = vpow2.f32 %v2026_v55  ;;  %v2411_v55 = vld [vmem:[%s3128_s16 + $0x64] ss:$16 sps:$4 sm:$0xff]  }
 0x915   :  { %2461 = vpow2.f32 %v2025_v56  ;;  %v2414_v56 = vld [vmem:[%s3128_s16 + $0x6c] ss:$16 sps:$4 sm:$0xff]  }
 0x91a   :  { %v2456_v57 = vpop.eup %2455 }
 0x91b   :  { %v2458_v58 = vpop.eup %2457  ;;  %v934_v59 = vadd.f32 1.0, %v2456_v57  ;;  %v2409_v57 = vld [vmem:[%s3128_s16 + $0x60] ss:$16 sps:$4 sm:$0xff]  }
 0x91c   :  { %v933_v60 = vadd.f32 1.0, %v2458_v58  ;;  %v2412_v58 = vld [vmem:[%s3128_s16 + $0x68] ss:$16 sps:$4 sm:$0xff]  }
 0x91d   :  { %2463 = vrcp.f32 %v934_v59  ;;  %v2041_v59 = vsel %vm1187_vm6, 1.0, %v2523_v34 }
 0x91e   :  { %v2460_v61 = vpop.eup %2459  ;;  %2465 = vrcp.f32 %v933_v60  ;;  %v2037_v60 = vld [vmem:[%s3127_s15] ss:$0 sm:$0xff] }
 0x91f   :  { %v2462_v62 = vpop.eup %2461  ;;  %v936_v63 = vadd.f32 1.0, %v2460_v61  ;;  %v1191_v61 = vsub.f32 1.0, %v2041_v59 }
 0x920   :  { %v935_v0 = vadd.f32 1.0, %v2462_v62 }
 0x921   :  { %2467 = vrcp.f32 %v936_v63 }
 0x922   :  { %2469 = vrcp.f32 %v935_v0 }
 0x927   :  { %v2464_v1 = vpop.eup %2463 }
 0x928   :  { %v2466_v2 = vpop.eup %2465  ;;  %v946_v3 = vmul.f32 %v2464_v1, %v2803_v27  ;;  %v2383_v27 = vld [vmem:[%s3124_s12 + $0x10] sm:$0xff]  }
 0x929   :  { %v945_v4 = vmul.f32 %v2466_v2, %v2800_v26  ;;  %v2382_v26 = vld [vmem:[%s3124_s12 + $0x8] sm:$0xff]  }
 0x92b   :  { %v2468_v5 = vpop.eup %2467  ;;  %v949_v7 = vpack.c.bf16 %v946_v3, %v945_v4 }
 0x92c   :  { %v2470_v8 = vpop.eup %2469  ;;  %v948_v9 = vmul.f32 %v2468_v5, %v2815_v14  ;;  %v2387_v14 = vld [vmem:[%s3124_s12 + $0x30] sm:$0xff]  }
 0x92d   :  { %2293 = vmatpush3.bf16.msra.mxu1 %v949_v7  ;;  %v947_v10 = vmul.f32 %v2470_v8, %v2812_v25  ;;  %v2386_v25 = vld [vmem:[%s3124_s12 + $0x28] sm:$0xff]   ;;  %v2419_v8 = vld [vmem:[%s3129_s17 + $0x40] sm:$0xff]  }
 0x92e   :  { %2294 = vmatprep.subr.bf16.mxu1 %v2523_v34 }
 0x92f   :  { %v950_v11 = vpack.c.bf16 %v948_v9, %v947_v10 }
 0x931   :  { %2295 = vmatpush3.bf16.msra.mxu1 %v950_v11 }
 0x932   :  { %2300 = vmatprep.subr.bf16.mxu1 %v2523_v34 }
 0x934   :  { %2297 = vmatmul.mubr.msk.bf16.vlgmr.msra.gmra.mrb[16].mxu1 %vm234_vm2, %v2823_v16  ;;  %v712_v16 = vld [vmem:[%s3123_s11] sm:$0x1] }
 0x935   :  { %2301 = vmatpush3.bf16.msra.mxu1 %v2381_v12  ;;  %2316 = vmatprep.mubr.msk.bf16.mxu1 %vm2524_vm3, %v2523_v34  ;;  %v998_v17 = vsub.f32 1.0, %v712_v16  ;;  %v995_v20 = vrot.slane %v712_v16, %v2843_v37  ;;  %v2415_v12 = vld [vmem:[%s3130_s18] sm:$0xff]   ;;  %v2429_v16 = vld [vmem:[%s3129_s17 + $0x10] sm:$0xff]  }
 0x936   :  { %2302 = vmatprep.subr.bf16.mxu1 %v2523_v34 }
 0x937   :  { %v1003_v18 = vrot.slane %v998_v17, %v2843_v37  ;;  %v2431_v17 = vld [vmem:[%s3129_s17 + $0x58] sm:$0xff]  }
 0x939   :  { %2303 = vmatpush3.bf16.msra.mxu1 %v2382_v26  ;;  %v1005_v22 = vmul.f32 %v1003_v18, %v2834_v19  ;;  %v2390_v19 = vld [vmem:[%s3126_s14 + $0x8] sm:$0xff]   ;;  %v2418_v18 = vld [vmem:[%s3130_s18 + $0x18] sm:$0xff]  }
 0x93a   :  { %2304 = vmatprep.subr.bf16.mxu1 %v2523_v34  ;;  %2323 = vmatpush3.bf16.msra.mxu0 %v2390_v19  ;;  %v2430_v19 = vld [vmem:[%s3129_s17 + $0x90] sm:$0xff]  }
 0x93b   :  { %1298 = vmatprep.subr.bf16.mxu0 %v2393_v45  ;;  %v2446_v45 = vld [vmem:[%s3129_s17 + $0xb0] sm:$0xff]  }
 0x93d   :  { %2305 = vmatpush3.bf16.msra.mxu1 %v2383_v27  ;;  %v2421_v27 = vld [vmem:[%s3129_s17] sm:$0xff]  }
 0x93e   :  { %2306 = vmatprep.subr.bf16.mxu1 %v2523_v34 }
 0x941   :  { %2307 = vmatpush3.bf16.msra.mxu1 %v2384_v28  ;;  %v2423_v28 = vld [vmem:[%s3129_s17 + $0x48] sm:$0xff]  }
 0x942   :  { %2308 = vmatprep.subr.bf16.mxu1 %v2523_v34 }
 0x945   :  { %2309 = vmatpush3.bf16.msra.mxu1 %v2385_v13  ;;  %v2416_v13 = vld [vmem:[%s3130_s18 + $0x8] sm:$0xff]  }
 0x946   :  { %2310 = vmatprep.subr.bf16.mxu1 %v2523_v34 }
 0x949   :  { %2311 = vmatpush3.bf16.msra.mxu1 %v2386_v25  ;;  %v2425_v25 = vld [vmem:[%s3129_s17 + $0x8] sm:$0xff]  }
 0x94a   :  { %2312 = vmatprep.subr.bf16.mxu1 %v2523_v34 }
 0x94d   :  { %2313 = vmatpush3.bf16.msra.mxu1 %v2387_v14  ;;  %v2427_v14 = vld [vmem:[%s3129_s17 + $0x50] sm:$0xff]  }
 0x94e   :  { %2314 = vmatprep.subr.bf16.mxu1 %v2523_v34 }
 0x951   :  { %2315 = vmatpush3.bf16.msra.mxu1 %v2388_v15  ;;  %v2417_v15 = vld [vmem:[%s3130_s18 + $0x10] sm:$0xff]  }
 0x952   :  { %1339 = vmatprep.subr.bf16.mxu1 %v2396_v47  ;;  %v2448_v47 = vld [vmem:[%s3129_s17 + $0xf8] sm:$0xff]  }
 0xa07   :  { %v985_v21 = vpop.f32.mrb[16].mxu1 }
 0xa08   :  { %v997_v23 = vmul.f32 %v995_v20, %v985_v21  ;;  %v2298_v24 = vpop.f32.mrb[17].mxu1  ;;  %v2420_v20 = vld [vmem:[%s3129_s17 + $0xc0] sm:$0xff]   ;;  %v2433_v21 = vld [vmem:[%s3129_s17 + $0x18] sm:$0xff]  }
 0xa09   :  { %v988_v29 = vpop.f32.mrb[18].mxu1  ;;  %v2424_v24 = vld [vmem:[%s3129_s17 + $0xc8] sm:$0xff]  }
 0xa0a   :  { %v1006_v30 = vadd.f32 %v1005_v22, %v997_v23  ;;  %v2299_v31 = vpop.f32.mrb[19].mxu1  ;;  %v2435_v22 = vld [vmem:[%s3129_s17 + $0x60] sm:$0xff]  }
 0xa0b   :  { %v2422_v23 = vld [vmem:[%s3129_s17 + $0x80] sm:$0xff]   ;;  %v2426_v31 = vld [vmem:[%s3129_s17 + $0x88] sm:$0xff]  }
 0xa0c   :  { %v1007_v32 = vpack.c.bf16 %v1006_v30, %v1006_v30  ;;  %v2437_v29 = vld [vmem:[%s3129_s17 + $0x20] sm:$0xff]   ;;  %v2439_v30 = vld [vmem:[%s3129_s17 + $0x68] sm:$0xff]  }
 0xa0e   :  { %2317 = vmatmul.mubr.bf16.vlgmr.msra.gmra.mrb[20].mxu1 %v1007_v32  ;;  %v2428_v32 = vld [vmem:[%s3129_s17 + $0xd0] sm:$0xff]  }
 0xa0f   :  { %1371 = vmatprep.mubr.bf16.mxu1 %v2520_v6  ;;  %1340 = vmatpush1.bf16.msra.mxu1 %v2394_v46  ;;  %v2447_v46 = vld [vmem:[%s3129_s17 + $0x78] sm:$0xff]  }
 0xa10   :  { %1341 = vmatprep.subr.bf16.mxu1 %v2402_v48  ;;  %v2450_v48 = vld [vmem:[%s3129_s17 + $0xb8] sm:$0xff]  }
 0xa13   :  { %1342 = vmatpush1.bf16.msra.mxu1 %v2400_v50 }
 0xa14   :  { %1343 = vmatprep.subr.bf16.mxu1 %v2408_v52 }
 0xa17   :  { %1344 = vmatpush1.bf16.msra.mxu1 %v2406_v54 }
 0xa18   :  { %1345 = vmatprep.subr.bf16.mxu1 %v2414_v56 }
 0xa1b   :  { %1346 = vmatpush1.bf16.msra.mxu1 %v2412_v58 }
 0xa1c   :  { %2162 = vmatprep.subr.bf16.mxu1 %v2419_v8 }
 0xae1   :  { %v1113_v37 = vpop.f32.mrb[20].mxu1 }
 0xae2   :  { %v1114_v39 = vadd.f32 %v2028_v36, %v1113_v37  ;;  %v2318_v38 = vpop.f32.mrb[21].mxu1  ;;  %v2432_v36 = vld [vmem:[%s3129_s17 + $0xd8] sm:$0xff]  }
 0xae3   :  { %v1116_v40 = vpop.f32.mrb[22].mxu1  ;;  %v2434_v37 = vld [vmem:[%s3129_s17 + $0x98] sm:$0xff]   ;;  %v2438_v38 = vld [vmem:[%s3129_s17 + $0xa0] sm:$0xff]  }
 0xae4   :  { %v1119_v41 = vmax.f32 %v1114_v39, 0.0  ;;  %v2319_v42 = vpop.f32.mrb[23].mxu1  ;;  %v2436_v39 = vld [vmem:[%s3129_s17 + $0xe0] sm:$0xff]   ;;  %v2440_v40 = vld [vmem:[%s3129_s17 + $0xe8] sm:$0xff]  }
 0xae5   :  { %v2443_v42 = vld [vmem:[%s3129_s17 + $0x70] sm:$0xff]  }
 0xae6   :  { %v1120_v43 = vpack.c.bf16 %v1119_v41, %v1119_v41  ;;  %v2442_v41 = vld [vmem:[%s3129_s17 + $0xa8] sm:$0xff]  }
 0xae8   :  { %2325 = vmatmul.mubr.msk.bf16.vlgmr.msra.gmra.mrb[20].mxu0 %vm234_vm2, %v1120_v43  ;;  %v2444_v43 = vld [vmem:[%s3129_s17 + $0xf0] sm:$0xff]  }
 0xae9   :  { %1330 = vmatprep.mubr.bf16.mxu0 %v2520_v6  ;;  %v2399_v6 = vld [vmem:[%s3128_s16 + $0x24] ss:$16 sps:$4 sm:$0xff]   ;;  %1299 = vmatpush1.bf16.msra.mxu0 %v2391_v44 }
 0xaea   :  { %1300 = vmatprep.subr.bf16.mxu0 %v2399_v6  ;;  %v2445_v44 = vld [vmem:[%s3129_s17 + $0x30] sm:$0xff]   ;;  %v2449_v6 = vld [vmem:[%s3129_s17 + $0x38] sm:$0xff]  }
 0xaed   :  { %1301 = vmatpush1.bf16.msra.mxu0 %v2397_v49 }
 0xaee   :  { %1302 = vmatprep.subr.bf16.mxu0 %v2405_v51 }
 0xaf1   :  { %1303 = vmatpush1.bf16.msra.mxu0 %v2403_v53 }
 0xaf2   :  { %1304 = vmatprep.subr.bf16.mxu0 %v2411_v55 }
 0xaf5   :  { %1305 = vmatpush1.bf16.msra.mxu0 %v2409_v57 }
 0xaf6   :  { %2328 = vmatprep.subr.bf16.mxu0 %v2523_v34 }
 0xbbb   :  { %v1181_v62 = vpop.f32.mrb[20].mxu0 }
 0xbbc   :  { %v1182_v63 = vadd.f32 %v2037_v60, %v1181_v62  ;;  %v2326_v0 = vpop.f32.mrb[21].mxu0 }
 0xbbd   :  { %v1184_v1 = vpop.f32.mrb[22].mxu0 }
 0xbbe   :  { %v2327_v2 = vpop.f32.mrb[23].mxu0  ;;  %v1192_v3 = vmul.f32 %v1191_v61, %v1182_v63  ;;  %v1924_v4 = vrot.slane %v1182_v63, 1  ;;  %v1190_v9 = vmul.f32 %v2041_v59, %v1182_v63 }
 0xbc0   :  { %1194 = vrot.lane.b32.xlu0 %v1192_v3, %s2521_s8  ;;  %v1926_v5 = vsub.f32 %v1182_v63, %v1924_v4 }
 0xbc2   :  { %v1927_v7 = vmul.f32 %v1926_v5, %v1926_v5 }
 0xbc4   :  { %v1929_v35 = vsel %vm1928_vm7, %v1927_v7, 0.0 }
 0xbc5   :  { %1930 = vadd.xlane.f32.xlu1 %v1929_v35 }
 0xc32   :  { %v1195_v10 = vpop.permute.xlu0 %1194 }
 0xc33   :  { %v1197_v11 = vsel %vm234_vm2, %v1190_v9, %v1195_v10  ;;  %v2451_v9 = vld [vmem:[%s3132_s20] sm:$0xff]  }
 0xc34   :  { %v1198_v26 = vpack.c.bf16 %v1197_v11, %v1197_v11 }
 0xc36   :  { %2058 = vmatmul.mubr.msk.bf16.vlgmr.msra.gmra.mrb[24].mxu0 %vm698_vm5, %v1198_v26  ;;  %2059 = vmatmul.mubr.msk.bf16.vlgmr.msra.gmra.mrb[24].mxu1 %vm698_vm5, %v1198_v26 }
 0xc37   :  { %2329 = vmatpush3.bf16.msra.mxu0 %v2415_v12  ;;  %2336 = vmatprep.mubr.msk.bf16.mxu0 %vm2524_vm3, %v2523_v34 }
 0xc38   :  { %2330 = vmatprep.subr.bf16.mxu0 %v2523_v34  ;;  %2163 = vmatpush3.bf16.msra.mxu1 %v2421_v27 }
 0xc39   :  { %2164 = vmatprep.subr.bf16.mxu1 %v2423_v28 }
 0xc3b   :  { %2331 = vmatpush3.bf16.msra.mxu0 %v2416_v13 }
 0xc3c   :  { %2332 = vmatprep.subr.bf16.mxu0 %v2523_v34  ;;  %2165 = vmatpush3.bf16.msra.mxu1 %v2425_v25 }
 0xc3d   :  { %2166 = vmatprep.subr.bf16.mxu1 %v2427_v14 }
 0xc3f   :  { %2333 = vmatpush3.bf16.msra.mxu0 %v2417_v15 }
 0xc40   :  { %2334 = vmatprep.subr.bf16.mxu0 %v2523_v34  ;;  %2167 = vmatpush3.bf16.msra.mxu1 %v2429_v16 }
 0xc41   :  { %2168 = vmatprep.subr.bf16.mxu1 %v2431_v17 }
 0xc43   :  { %2335 = vmatpush3.bf16.msra.mxu0 %v2418_v18 }
 0xc44   :  { %2184 = vmatprep.subr.bf16.mxu0 %v2420_v20  ;;  %2169 = vmatpush3.bf16.msra.mxu1 %v2433_v21  ;;  %v1812_v20 = vld [vmem:[%s3131_s19] sm:$0x1]  ;;  %s1975_s19 = sld [smem:[#allocation3 + $0x1]] }
 0xc45   :  { %2170 = vmatprep.subr.bf16.mxu1 %v2435_v22 }
 0xc46   :  { %2337 = vmatmul.mubr.msk.bf16.vlgmr.msra.gmra.mrb[28].mxu0 %vm698_vm5, %v1198_v26 }
 0xc47   :  { %2185 = vmatpush3.bf16.msra.mxu0 %v2422_v23 }
 0xc48   :  { %2186 = vmatprep.subr.bf16.mxu0 %v2424_v24  ;;  %2171 = vmatpush3.bf16.msra.mxu1 %v2437_v29  ;;  %v2452_v29 = vld [vmem:[%s3134_s22] sm:$0xff]   ;;  %s2526_s22 = smov [#allocation6]  }
 0xc49   :  { %2172 = vmatprep.subr.bf16.mxu1 %v2439_v30  ;;  %v1818_v30 = vld [vmem:[%s3133_s21] sm:$0x1]  ;;  %s1966_s8 = sshll.u32 %s2526_s22, 4  ;;  %s1967_s8 = int_to_ptr.vmem [resolvable:$true] %s1966_s8 }
 0xc4a   :  { %s1947_s21 = ssub.f32 1.0, %s1975_s19  ;;  %s2493_s12 = scalar_lea.vmem %s1967_s8, 16 }
 0xc4b   :  { %2187 = vmatpush3.bf16.msra.mxu0 %v2426_v31  ;;  %p2494_p5 = scmp.ne.s32.totalorder %s1967_s8, %s2493_s12  ;;  %s2497_s18 = scalar_lea.vmem %s1967_s8, 32 }
 0xc4c   :  { %2188 = vmatprep.subr.bf16.mxu0 %v2428_v32  ;;  %2173 = vmatpush3.bf16.msra.mxu1 %v2441_v33  ;;  %p2498_p6 = scmp.lt.s32.totalorder %s1967_s8, %s1967_s8  ;;  %p2499_p7 = scmp.lt.s32.totalorder %s2497_s18, %s2493_s12 }
 0xc4d   :  { %2174 = vmatprep.subr.bf16.mxu1 %v2443_v42 }
 0xc4e   :  { %p2500_p8 = por %p2499_p7, %p2498_p6 }
 0xc4f   :  { %2189 = vmatpush3.bf16.msra.mxu0 %v2430_v19 }
 0xc50   :  { %2190 = vmatprep.subr.bf16.mxu0 %v2432_v36  ;;  %2175 = vmatpush3.bf16.msra.mxu1 %v2445_v44  ;;  %p2501_p9 = pnand %p2500_p8, %p2494_p5 }
 0xc51   :  { %2176 = vmatprep.subr.bf16.mxu1 %v2447_v46  ;;  %v1873_v46 = vld [vmem:[#allocation2] sm:$0x1] }
 0xc53   :  { %2191 = vmatpush3.bf16.msra.mxu0 %v2434_v37 }
 0xc54   :  { %2192 = vmatprep.subr.bf16.mxu0 %v2436_v39  ;;  %2177 = vmatpush3.bf16.msra.mxu1 %v2449_v6 }
 0xc55   :  { %2340 = vmatprep.subr.bf16.mxu1 %v2523_v34 }
 0xc57   :  { %2193 = vmatpush3.bf16.msra.mxu0 %v2438_v38  ;;  %v1931_v38 = vpop.xlane.xlu1 %1930 }
 0xc58   :  { %2194 = vmatprep.subr.bf16.mxu0 %v2440_v40  ;;  %2471 = vrsqrt.f32 %v1931_v38  ;;  %vm1934_vm9 = vcmp.eq.f32.partialorder %v1931_v38, inf  ;;  %v1937_v42 = vand.u32 2147483648, %v1931_v38  ;;  %vm1936_vm10 = vcmp.eq.f32.partialorder %v1931_v38, 0.0 }
 0xc5b   :  { %2195 = vmatpush3.bf16.msra.mxu0 %v2442_v41 }
 0xc5c   :  { %2196 = vmatprep.subr.bf16.mxu0 %v2444_v43 }
 0xc5f   :  { %2197 = vmatpush3.bf16.msra.mxu0 %v2446_v45 }
 0xc60   :  { %2198 = vmatprep.subr.bf16.mxu0 %v2448_v47 }
 0xc63   :  { %2199 = vmatpush3.bf16.msra.mxu0 %v2450_v48 }
 0xd09   :  { %v1332_v49 = vpop.f32.mrb[24].mxu0  ;;  %v1373_v50 = vpop.f32.mrb[24].mxu1 }
 0xd0a   :  { %v1384_v51 = vrot.slane %v1332_v49, 1  ;;  %v1386_v52 = vrot.slane %v1373_v50, 1  ;;  %v1334_v53 = vpop.f32.mrb[25].mxu0  ;;  %v1375_v54 = vpop.f32.mrb[25].mxu1 }
 0xd0b   :  { %v1385_v55 = vrot.slane %v1334_v53, 1  ;;  %v1387_v56 = vrot.slane %v1375_v54, 1  ;;  %v1336_v57 = vpop.f32.mrb[26].mxu0  ;;  %v1377_v58 = vpop.f32.mrb[26].mxu1 }
 0xd0c   :  { %v1392_v59 = vmul.f32 %v1384_v51, %v1332_v49  ;;  %v1394_v60 = vmul.f32 %v1386_v52, %v1373_v50  ;;  %v1337_v61 = vpop.f32.mrb[27].mxu0  ;;  %v1378_v62 = vpop.f32.mrb[27].mxu1  ;;  %v1945_v57 = vstv %s1975_s19  ;;  %v1955_v58 = vstv %s1947_s21 }
 0xd0d   :  { %v1393_v63 = vmul.f32 %v1385_v55, %v1334_v53  ;;  %v1395_v0 = vmul.f32 %v1387_v56, %v1375_v54 }
 0xd0e   :  { %v1396_v3 = vpack.c.bf16 %v1392_v59, %v1392_v59  ;;  %v1398_v4 = vpack.c.bf16 %v1394_v60, %v1394_v60 }
 0xd0f   :  { %v1397_v1 = vpack.c.bf16 %v1393_v63, %v1393_v63  ;;  %v1399_v2 = vpack.c.bf16 %v1395_v0, %v1395_v0 }
 0xd11   :  { %1764 = vmatprep.mubr.bf16.mxu1 %v1397_v1  ;;  %1804 = vmatprep.mubr.bf16.mxu0 %v1399_v2 }
 0xd12   :  { %1765 = vmatmul.mubr.bf16.vlgmr.msra.gmra.mrb[28].mxu1 %v1396_v3  ;;  %1805 = vmatmul.mubr.bf16.vlgmr.msra.gmra.mrb[32].mxu0 %v1398_v4 }
 0xd13   :  { %2342 = vmatprep.mubr.msk.bf16.mxu1 %vm2524_vm3, %v2523_v34  ;;  %2341 = vmatpush3.bf16.msra.mxu1 %v2451_v9 }
 0xd14   :  { %2346 = vmatprep.subr.bf16.mxu1 %v2523_v34 }
 0xd19   :  { %v1530_v5 = vpop.f32.mrb[28].mxu0 }
 0xd1a   :  { %v2338_v7 = vpop.f32.mrb[29].mxu0  ;;  %v1537_v10 = vrot.slane %v1530_v5, 1 }
 0xd1b   :  { %v1533_v35 = vpop.f32.mrb[30].mxu0 }
 0xd1c   :  { %v2339_v8 = vpop.f32.mrb[31].mxu0  ;;  %v1539_v28 = vadd.f32 %v1537_v10, %v1530_v5 }
 0xde5   :  { %v2178_v11 = vpop.f32.mrb[28].mxu1  ;;  %v2200_v12 = vpop.f32.mrb[32].mxu0 }
 0xde6   :  { %v2179_v26 = vpop.f32.mrb[29].mxu1  ;;  %v2201_v27 = vpop.f32.mrb[33].mxu0 }
 0xde7   :  { %v2180_v13 = vadd.f32 %v2179_v26, %v2178_v11  ;;  %v2202_v25 = vadd.f32 %v2201_v27, %v2200_v12  ;;  %v2181_v14 = vpop.f32.mrb[30].mxu1  ;;  %v2203_v15 = vpop.f32.mrb[34].mxu0 }
 0xde8   :  { %v2182_v16 = vpop.f32.mrb[31].mxu1  ;;  %v2204_v17 = vpop.f32.mrb[35].mxu0 }
 0xde9   :  { %v1767_v18 = vadd.f32 %v2180_v13, %v1539_v28 }
 0xdeb   :  { %v1807_v21 = vadd.f32 %v2202_v25, %v1767_v18 }
 0xded   :  { %v1813_v22 = vadd.f32 %v1812_v20, %v1807_v21 }
 0xdef   :  { %v1814_v23 = vmax.f32 %v1813_v22, 0.0 }
 0xdf1   :  { %v1815_v24 = vpack.c.bf16 %v1814_v23, %v1814_v23 }
 0xdf3   :  { %2343 = vmatmul.mubr.msk.bf16.vlgmr.msra.gmra.mrb[32].mxu1 %vm1825_vm8, %v1815_v24 }
 0xdf4   :  { %2348 = vmatprep.mubr.msk.bf16.mxu1 %vm2524_vm3, %v2523_v34  ;;  %2347 = vmatpush3.bf16.msra.mxu1 %v2452_v29  ;;  %v2472_v34 = vpop.eup %2471 }
 0xdf5   :  { %v1933_v40 = vmul.f32 %v2472_v34, %v1931_v38 }
 0xdf7   :  { %v1935_v41 = vsel %vm1934_vm9, %v1931_v38, %v1933_v40 }
 0xdf8   :  { %v1938_v43 = vsel %vm1936_vm10, %v1937_v42, %v1935_v41 }
 0xdf9   :  { %v1948_v44 = vsub.f32 0.0, %v1938_v43 }
 0xdfb   :  { %v2102_v45 = vmul.f32 -1.442695, %v1948_v44 }
 0xdfd   :  { %2473 = vpow2.f32 %v2102_v45 }
 0xe07   :  { %v2474_v52 = vpop.eup %2473 }
 0xe08   :  { %v1952_v53 = vadd.f32 1.0, %v2474_v52 }
 0xec6   :  { %v1863_v31 = vpop.f32.mrb[32].mxu1 }
 0xec7   :  { %v1864_v32 = vadd.f32 %v1863_v31, %v1818_v30  ;;  %v2344_v33 = vpop.f32.mrb[33].mxu1 }
 0xec8   :  { %v1866_v19 = vpop.f32.mrb[34].mxu1 }
 0xec9   :  { %v1869_v36 = vmax.f32 %v1864_v32, 0.0  ;;  %v2345_v37 = vpop.f32.mrb[35].mxu1 }
 0xecb   :  { %v1870_v39 = vpack.c.bf16 %v1869_v36, %v1869_v36 }
 0xecd   :  { %2349 = vmatmul.mubr.msk.bf16.vlgmr.msra.gmra.mrb[36].mxu1 %vm1825_vm8, %v1870_v39 }
 0xfa0   :  { %v1917_v47 = vpop.f32.mrb[36].mxu1 }
 0xfa1   :  { %v1918_v6 = vadd.f32 %v1917_v47, %v1873_v46  ;;  %v2350_v48 = vpop.f32.mrb[37].mxu1 }
 0xfa2   :  { %v1920_v49 = vpop.f32.mrb[38].mxu1 }
 0xfa3   :  { %v2101_v50 = vmul.f32 -1.442695, %v1918_v6  ;;  %v2351_v51 = vpop.f32.mrb[39].mxu1 }
 0xfa5   :  { %2475 = vpow2.f32 %v2101_v50 }
 0xfa6   :  { %2477 = vrcp.f32 %v1952_v53 }
 0xfaf   :  { %v2476_v54 = vpop.eup %2475 }
 0xfb0   :  { %v1942_v55 = vadd.f32 1.0, %v2476_v54  ;;  %v2478_v56 = vpop.eup %2477 }
 0xfb1   :  { %v1956_v61 = vmul.f32 %v2478_v56, %v1955_v58 }
 0xfb2   :  { %2479 = vrcp.f32 %v1942_v55 }
 0xfbc   :  { %v2480_v59 = vpop.eup %2479 }
 0xfbd   :  { %v1946_v60 = vmul.f32 %v2480_v59, %v1945_v57 }
 0xfbf   :  { %v1957_v62 = vadd.f32 %v1956_v61, %v1946_v60 }
 0xfc1   :  { %1959 = vst.msk [vmem:[#allocation6] sm:$0x1] %vm1958_vm11, %v1957_v62 }
 0xfc2   :  { %2504 = shalt.err (!%p2501_p9)
}
 0xfc3   :  { %s2505_s26 = scalar_lea.hbm %s3136_s24, 16 }
 0xfc4   :  { %p2506_p10 = scmp.ne.s32.totalorder %s3136_s24, %s2505_s26  ;;  %p2509_p11 = scmp.lt.u32.totalorder %s2505_s26, %s3136_s24 }
 0xfc6   :  { %p2511_p12 = pnand %p2509_p11, %p2506_p10 }
 0xfc8   :  { %2514 = shalt.err (!%p2511_p12)
}
 0xfc9   :  { %1969 = dma.vmem_to_hbm [thread:$0]  %s1967_s8, 16, %s3136_s24, [#allocation4]  }
 0xfca   :  { %2517 = dma.done.wait [#allocation4], 16  }
 0xfcb   :  { %2518 = vsyncadd [#allocation4], 4294967280 }
 0xfcc   :  { %1973 = vsyncpa [#allocation4], 1 }
 0xfcd   :  { %1974 = vsyncpa [#allocation5], 1 }

</bundles_post_ra>
